<compile_context>
chip_gen: v7x
topology: tpu7x:2x2x1
jax: 0.10.0
libtpu: 0.0.40
codegen_flags: <defaults>
</compile_context>

<pallas_src>
import functools
import math

import jax
import jax.numpy as jnp
from jax import lax
from jax.experimental import pallas as pl
from jax.experimental.pallas import tpu as pltpu


def _transformer_block_kernel(x_ref,
                              wq_ref, wk_ref, wv_ref,
                              bq_ref, bk_ref, bv_ref,
                              wo_ref, bo_ref,
                              w1_ref, b1_ref, w2_ref, b2_ref,
                              g1_ref, be1_ref, g2_ref, be2_ref,
                              o_ref,
                              attn_sc,
                              *, heads, batch_block, seq_len, eps=1e-5):
    x = x_ref[...]                          # (Bt*S, D) f32 tokens for this step
    D = x.shape[-1]
    hd = D // heads

    xb = x.astype(jnp.bfloat16)

    # --- QKV projections over all Bt*S tokens at once (scale folded into wq/bq) ---
    q = jnp.dot(xb, wq_ref[...], preferred_element_type=jnp.float32) + bq_ref[...]
    k = jnp.dot(xb, wk_ref[...], preferred_element_type=jnp.float32) + bk_ref[...]
    v = jnp.dot(xb, wv_ref[...], preferred_element_type=jnp.float32) + bv_ref[...]
    qb = q.astype(jnp.bfloat16)
    kb = k.astype(jnp.bfloat16)
    vb = v.astype(jnp.bfloat16)

    # --- per (batch, head) softmax attention; heads concatenated in VMEM scratch ---
    # TODO(synk): for long sequences replace the materialized (S, S) scores with a
    # flash-style online-softmax loop over K/V tiles (matters on v7x's 64 MiB VMEM).
    for b in range(batch_block):
        r0, r1 = b * seq_len, (b + 1) * seq_len
        for h in range(heads):
            lo, hi = h * hd, (h + 1) * hd
            qh = qb[r0:r1, lo:hi]            # (S, hd) bf16, already pre-scaled
            kh = kb[r0:r1, lo:hi]
            vh = vb[r0:r1, lo:hi]
            s = lax.dot_general(qh, kh, (((1,), (1,)), ((), ())),
                                preferred_element_type=jnp.float32)   # (S, S) f32
            s = s - jnp.max(s, axis=-1, keepdims=True)
            p = jnp.exp(s)
            p = p * pl.reciprocal(jnp.sum(p, axis=-1, keepdims=True), approx=True)
            oh = jnp.dot(p.astype(jnp.bfloat16), vh,
                         preferred_element_type=jnp.float32)          # (S, hd) f32
            attn_sc[r0:r1, lo:hi] = oh

    # --- single full-K output projection over concatenated heads ---
    attn_out = jnp.dot(attn_sc[...].astype(jnp.bfloat16), wo_ref[...],
                       preferred_element_type=jnp.float32) + bo_ref[...]

    def layer_norm(z, g, b_):
        mu = jnp.mean(z, axis=-1, keepdims=True)
        var = jnp.mean((z - mu) * (z - mu), axis=-1, keepdims=True)
        return (z - mu) * lax.rsqrt(var + eps) * g + b_

    # --- residual + norm1 ---
    x1 = layer_norm(x + attn_out, g1_ref[...], be1_ref[...])

    # --- feed-forward (Linear -> ReLU -> Linear) over all tokens in the block ---
    h1 = jnp.dot(x1.astype(jnp.bfloat16), w1_ref[...],
                 preferred_element_type=jnp.float32) + b1_ref[...]
    h1 = jnp.maximum(h1, 0.0)
    ff = jnp.dot(h1.astype(jnp.bfloat16), w2_ref[...],
                 preferred_element_type=jnp.float32) + b2_ref[...]

    # --- residual + norm2 ---
    x2 = layer_norm(x1 + ff, g2_ref[...], be2_ref[...])
    o_ref[...] = x2.astype(o_ref.dtype)


def transformer_block(x, params, heads, *, batch_block=None):
    B, S, D = x.shape
    F = params['w1'].shape[1]
    assert D % heads == 0

    if batch_block is None:
        batch_block = 1
        for cand in range(B, 0, -1):          # largest divisor with <= 512 token rows
            if B % cand == 0 and cand * S <= 512:
                batch_block = cand
                break
    assert B % batch_block == 0
    rows = batch_block * S

    kernel = functools.partial(_transformer_block_kernel, heads=heads,
                               batch_block=batch_block, seq_len=S)

    weight_names = ('wq', 'wk', 'wv', 'bq', 'bk', 'bv', 'wo', 'bo',
                    'w1', 'b1', 'w2', 'b2', 'g1', 'be1', 'g2', 'be2')
    weight_args = [params[n] for n in weight_names]

    def full_spec(a):
        return pl.BlockSpec(a.shape, lambda i, n=a.ndim: (0,) * n)

    in_specs = [pl.BlockSpec((rows, D), lambda i: (i, 0))] + \
               [full_spec(a) for a in weight_args]
    out_specs = pl.BlockSpec((rows, D), lambda i: (i, 0))

    # Advisory cost estimate for XLA's scheduler.
    flops = int(B * (8 * S * D * D + 4 * S * S * D + 4 * S * D * F))
    transcendentals = int(B * (heads * S * S + 4 * S))
    bytes_accessed = int(2 * B * S * D * 4                 # x in + out (f32)
                         + (4 * D * D + 2 * D * F) * 2     # bf16 matmul weights
                         + (9 * D + F) * 4)                # biases + LN params (f32)

    x2d = x.reshape(B * S, D)
    out2d = pl.pallas_call(
        kernel,
        out_shape=jax.ShapeDtypeStruct((B * S, D), jnp.float32),
        grid_spec=pltpu.PrefetchScalarGridSpec(
            num_scalar_prefetch=0,
            grid=(B // batch_block,),
            in_specs=in_specs,
            out_specs=out_specs,
            scratch_shapes=[pltpu.VMEM((rows, D), jnp.float32)],
        ),
        compiler_params=pltpu.CompilerParams(
            dimension_semantics=("parallel",),       # batch steps are independent
            vmem_limit_bytes=32 * 1024 * 1024),
        cost_estimate=pl.CostEstimate(flops=flops,
                                      transcendentals=transcendentals,
                                      bytes_accessed=bytes_accessed),
    )(x2d, *weight_args)
    return out2d.reshape(B, S, D)


# ----------------------------- parameters & references -----------------------------

def init_torch_params(key, dim, heads, ff_dim):
    """PyTorch-layout parameters (nn.MultiheadAttention / nn.Linear / nn.LayerNorm)."""
    ks = jax.random.split(key, 8)
    s = 0.05
    return {
        'in_w': (jax.random.normal(ks[0], (3 * dim, dim)) * s).astype(jnp.float32),
        'in_b': (jax.random.normal(ks[1], (3 * dim,)) * s).astype(jnp.float32),
        'out_w': (jax.random.normal(ks[2], (dim, dim)) * s).astype(jnp.float32),
        'out_b': (jax.random.normal(ks[3], (dim,)) * s).astype(jnp.float32),
        'ff1_w': (jax.random.normal(ks[4], (ff_dim, dim)) * s).astype(jnp.float32),
        'ff1_b': (jax.random.normal(ks[5], (ff_dim,)) * s).astype(jnp.float32),
        'ff2_w': (jax.random.normal(ks[6], (dim, ff_dim)) * s).astype(jnp.float32),
        'ff2_b': (jax.random.normal(ks[7], (dim,)) * s).astype(jnp.float32),
        'g1': jnp.ones((dim,), jnp.float32), 'be1': jnp.zeros((dim,), jnp.float32),
        'g2': jnp.ones((dim,), jnp.float32), 'be2': jnp.zeros((dim,), jnp.float32),
    }


def prepare_kernel_params(tp, dim, heads):
    """Pre-transpose (x @ W), fold 1/sqrt(hd) into Wq/bq, bf16 the matmul weights."""
    hd = dim // heads
    scale = 1.0 / math.sqrt(hd)
    return {
        'wq': (tp['in_w'][:dim].T * scale).astype(jnp.bfloat16),
        'wk': tp['in_w'][dim:2 * dim].T.astype(jnp.bfloat16),
        'wv': tp['in_w'][2 * dim:].T.astype(jnp.bfloat16),
        'bq': (tp['in_b'][:dim] * scale).reshape(1, dim),
        'bk': tp['in_b'][dim:2 * dim].reshape(1, dim),
        'bv': tp['in_b'][2 * dim:].reshape(1, dim),
        'wo': tp['out_w'].T.astype(jnp.bfloat16),
        'bo': tp['out_b'].reshape(1, dim),
        'w1': tp['ff1_w'].T.astype(jnp.bfloat16),
        'b1': tp['ff1_b'].reshape(1, -1),
        'w2': tp['ff2_w'].T.astype(jnp.bfloat16),
        'b2': tp['ff2_b'].reshape(1, dim),
        'g1': tp['g1'].reshape(1, dim), 'be1': tp['be1'].reshape(1, dim),
        'g2': tp['g2'].reshape(1, dim), 'be2': tp['be2'].reshape(1, dim),
    }


def reference_block_f32(x, tp, heads, eps=1e-5):
    """Exact f32 reference mirroring PyTorch AudioTransformerBlock.forward."""
    B, S, D = x.shape
    hd = D // heads

    def ln(z, g, b):
        mu = jnp.mean(z, axis=-1, keepdims=True)
        var = jnp.mean((z - mu) ** 2, axis=-1, keepdims=True)
        return (z - mu) / jnp.sqrt(var + eps) * g + b

    wq, wk, wv = tp['in_w'][:D], tp['in_w'][D:2 * D], tp['in_w'][2 * D:]
    bq, bk, bv = tp['in_b'][:D], tp['in_b'][D:2 * D], tp['in_b'][2 * D:]
    q = (x @ wq.T + bq).reshape(B, S, heads, hd).transpose(0, 2, 1, 3)
    k = (x @ wk.T + bk).reshape(B, S, heads, hd).transpose(0, 2, 1, 3)
    v = (x @ wv.T + bv).reshape(B, S, heads, hd).transpose(0, 2, 1, 3)
    s = jnp.einsum('bhqd,bhkd->bhqk', q, k) / jnp.sqrt(jnp.float32(hd))
    p = jax.nn.softmax(s, axis=-1)
    o = jnp.einsum('bhqk,bhkd->bhqd', p, v).transpose(0, 2, 1, 3).reshape(B, S, D)
    attn_out = o @ tp['out_w'].T + tp['out_b']
    x1 = ln(x + attn_out, tp['g1'], tp['be1'])
    ff = jnp.maximum(x1 @ tp['ff1_w'].T + tp['ff1_b'], 0.0) @ tp['ff2_w'].T + tp['ff2_b']
    return ln(x1 + ff, tp['g2'], tp['be2'])


def reference_block_bf16(x, p, heads, eps=1e-5):
    """Reference mirroring the kernel's numerics (bf16 matmul inputs, f32 accum)."""
    B, S, D = x.shape
    hd = D // heads
    bf = jnp.bfloat16

    def dot(a, b):
        return jnp.dot(a.astype(bf), b, preferred_element_type=jnp.float32)

    def ln(z, g, b):
        mu = jnp.mean(z, axis=-1, keepdims=True)
        var = jnp.mean((z - mu) ** 2, axis=-1, keepdims=True)
        return (z - mu) / jnp.sqrt(var + eps) * g + b

    xf = x.reshape(B * S, D)
    q = (dot(xf, p['wq']) + p['bq']).reshape(B, S, heads, hd).transpose(0, 2, 1, 3)
    k = (dot(xf, p['wk']) + p['bk']).reshape(B, S, heads, hd).transpose(0, 2, 1, 3)
    v = (dot(xf, p['wv']) + p['bv']).reshape(B, S, heads, hd).transpose(0, 2, 1, 3)
    s = jnp.einsum('bhqd,bhkd->bhqk', q.astype(bf), k.astype(bf),
                   preferred_element_type=jnp.float32)
    pr = jax.nn.softmax(s, axis=-1)
    o = jnp.einsum('bhqk,bhkd->bhqd', pr.astype(bf), v.astype(bf),
                   preferred_element_type=jnp.float32)
    o = o.transpose(0, 2, 1, 3).reshape(B * S, D)
    attn_out = dot(o, p['wo']) + p['bo']
    x1 = ln(xf + attn_out, p['g1'], p['be1'])
    h1 = jnp.maximum(dot(x1, p['w1']) + p['b1'], 0.0)
    x2 = ln(x1 + dot(h1, p['w2']) + p['b2'], p['g2'], p['be2'])
    return x2.reshape(B, S, D)


if __name__ == "__main__":
    # Small but TPU-friendly shapes: D = 128 keeps every block lane-dense,
    # head_dim = 32 is a sublane multiple.
    B, S, D, H, F = 4, 16, 128, 4, 256
    key = jax.random.PRNGKey(0)
    kx, kp = jax.random.split(key)
    x = jax.random.normal(kx, (B, S, D), dtype=jnp.float32)

    torch_params = init_torch_params(kp, D, H, F)
    kparams = prepare_kernel_params(torch_params, D, H)

    out = transformer_block(x, kparams, heads=H, batch_block=2)
    out = jax.block_until_ready(out)
    assert out.shape == (B, S, D)

    ref_mirror = reference_block_bf16(x, kparams, heads=H)   # same bf16 numerics
    ref_exact = reference_block_f32(x, torch_params, heads=H)  # full-f32 semantics

    err_mirror = jnp.max(jnp.abs(out - ref_mirror))
    err_exact = jnp.max(jnp.abs(out - ref_exact))
    assert jnp.allclose(out, ref_mirror, atol=2e-2, rtol=2e-2), \
        f"mirror max abs diff {err_mirror}"
    assert jnp.allclose(out, ref_exact, atol=1e-1, rtol=1e-1), \
        f"exact max abs diff {err_exact}"
    print("KERNEL_OK")
</pallas_src>

<mosaic_0001>
module attributes {stable_mosaic.version = 11 : i64} {
  func.func @_transformer_block_kernel(%arg0: i32, %arg1: memref<32x128xf32, #tpu.memory_space<vmem>>, %arg2: memref<128x128xbf16, #tpu.memory_space<vmem>>, %arg3: memref<128x128xbf16, #tpu.memory_space<vmem>>, %arg4: memref<128x128xbf16, #tpu.memory_space<vmem>>, %arg5: memref<1x128xf32, #tpu.memory_space<vmem>>, %arg6: memref<1x128xf32, #tpu.memory_space<vmem>>, %arg7: memref<1x128xf32, #tpu.memory_space<vmem>>, %arg8: memref<128x128xbf16, #tpu.memory_space<vmem>>, %arg9: memref<1x128xf32, #tpu.memory_space<vmem>>, %arg10: memref<128x256xbf16, #tpu.memory_space<vmem>>, %arg11: memref<1x256xf32, #tpu.memory_space<vmem>>, %arg12: memref<256x128xbf16, #tpu.memory_space<vmem>>, %arg13: memref<1x128xf32, #tpu.memory_space<vmem>>, %arg14: memref<1x128xf32, #tpu.memory_space<vmem>>, %arg15: memref<1x128xf32, #tpu.memory_space<vmem>>, %arg16: memref<1x128xf32, #tpu.memory_space<vmem>>, %arg17: memref<1x128xf32, #tpu.memory_space<vmem>>, %arg18: memref<32x128xf32, #tpu.memory_space<vmem>>, %arg19: memref<32x128xf32, #tpu.memory_space<vmem>>) attributes {dimension_semantics = [#tpu.dimension_semantics<parallel>], iteration_bounds = array<i64: 2>, scalar_prefetch = 0 : i64, scratch_operands = 1 : i64, tpu.core_type = #tpu.core_type<tc>, window_params = [{transform_indices = @transform_0, window_bounds = array<i64: 32, 128>}, {pipeline_mode = #tpu.pipeline_mode<synchronous>, transform_indices = @transform_1, window_bounds = array<i64: 128, 128>}, {pipeline_mode = #tpu.pipeline_mode<synchronous>, transform_indices = @transform_2, window_bounds = array<i64: 128, 128>}, {pipeline_mode = #tpu.pipeline_mode<synchronous>, transform_indices = @transform_3, window_bounds = array<i64: 128, 128>}, {pipeline_mode = #tpu.pipeline_mode<synchronous>, transform_indices = @transform_4, window_bounds = array<i64: 1, 128>}, {pipeline_mode = #tpu.pipeline_mode<synchronous>, transform_indices = @transform_5, window_bounds = array<i64: 1, 128>}, {pipeline_mode = #tpu.pipeline_mode<synchronous>, transform_indices = @transform_6, window_bounds = array<i64: 1, 128>}, {pipeline_mode = #tpu.pipeline_mode<synchronous>, transform_indices = @transform_7, window_bounds = array<i64: 128, 128>}, {pipeline_mode = #tpu.pipeline_mode<synchronous>, transform_indices = @transform_8, window_bounds = array<i64: 1, 128>}, {pipeline_mode = #tpu.pipeline_mode<synchronous>, transform_indices = @transform_9, window_bounds = array<i64: 128, 256>}, {pipeline_mode = #tpu.pipeline_mode<synchronous>, transform_indices = @transform_10, window_bounds = array<i64: 1, 256>}, {pipeline_mode = #tpu.pipeline_mode<synchronous>, transform_indices = @transform_11, window_bounds = array<i64: 256, 128>}, {pipeline_mode = #tpu.pipeline_mode<synchronous>, transform_indices = @transform_12, window_bounds = array<i64: 1, 128>}, {pipeline_mode = #tpu.pipeline_mode<synchronous>, transform_indices = @transform_13, window_bounds = array<i64: 1, 128>}, {pipeline_mode = #tpu.pipeline_mode<synchronous>, transform_indices = @transform_14, window_bounds = array<i64: 1, 128>}, {pipeline_mode = #tpu.pipeline_mode<synchronous>, transform_indices = @transform_15, window_bounds = array<i64: 1, 128>}, {pipeline_mode = #tpu.pipeline_mode<synchronous>, transform_indices = @transform_16, window_bounds = array<i64: 1, 128>}, {transform_indices = @transform_17, window_bounds = array<i64: 32, 128>}]} {
    %c0 = arith.constant 0 : index
    %c0_0 = arith.constant 0 : index
    %0 = vector.load %arg1[%c0, %c0_0] : memref<32x128xf32, #tpu.memory_space<vmem>>, vector<32x128xf32>
    %1 = arith.truncf %0 : vector<32x128xf32> to vector<32x128xbf16>
    %c0_1 = arith.constant 0 : index
    %c0_2 = arith.constant 0 : index
    %2 = vector.load %arg2[%c0_1, %c0_2] : memref<128x128xbf16, #tpu.memory_space<vmem>>, vector<128x128xbf16>
    %cst = arith.constant dense<0.000000e+00> : vector<32x128xf32>
    %3 = tpu.matmul %1, %2, %cst {dimension_numbers = #tpu.dot_dimension_numbers<[1], [0], [0], [1], [0, 0, 1, 1], [], []>} : vector<32x128xbf16>, vector<128x128xbf16>, vector<32x128xf32> -> vector<32x128xf32>
    %c0_3 = arith.constant 0 : index
    %c0_4 = arith.constant 0 : index
    %4 = vector.load %arg5[%c0_3, %c0_4] : memref<1x128xf32, #tpu.memory_space<vmem>>, vector<1x128xf32>
    %5 = vector.broadcast %4 : vector<1x128xf32> to vector<32x128xf32>
    %6 = arith.addf %3, %5 : vector<32x128xf32>
    %c0_5 = arith.constant 0 : index
    %c0_6 = arith.constant 0 : index
    %7 = vector.load %arg3[%c0_5, %c0_6] : memref<128x128xbf16, #tpu.memory_space<vmem>>, vector<128x128xbf16>
    %cst_7 = arith.constant dense<0.000000e+00> : vector<32x128xf32>
    %8 = tpu.matmul %1, %7, %cst_7 {dimension_numbers = #tpu.dot_dimension_numbers<[1], [0], [0], [1], [0, 0, 1, 1], [], []>} : vector<32x128xbf16>, vector<128x128xbf16>, vector<32x128xf32> -> vector<32x128xf32>
    %c0_8 = arith.constant 0 : index
    %c0_9 = arith.constant 0 : index
    %9 = vector.load %arg6[%c0_8, %c0_9] : memref<1x128xf32, #tpu.memory_space<vmem>>, vector<1x128xf32>
    %10 = vector.broadcast %9 : vector<1x128xf32> to vector<32x128xf32>
    %11 = arith.addf %8, %10 : vector<32x128xf32>
    %c0_10 = arith.constant 0 : index
    %c0_11 = arith.constant 0 : index
    %12 = vector.load %arg4[%c0_10, %c0_11] : memref<128x128xbf16, #tpu.memory_space<vmem>>, vector<128x128xbf16>
    %cst_12 = arith.constant dense<0.000000e+00> : vector<32x128xf32>
    %13 = tpu.matmul %1, %12, %cst_12 {dimension_numbers = #tpu.dot_dimension_numbers<[1], [0], [0], [1], [0, 0, 1, 1], [], []>} : vector<32x128xbf16>, vector<128x128xbf16>, vector<32x128xf32> -> vector<32x128xf32>
    %c0_13 = arith.constant 0 : index
    %c0_14 = arith.constant 0 : index
    %14 = vector.load %arg7[%c0_13, %c0_14] : memref<1x128xf32, #tpu.memory_space<vmem>>, vector<1x128xf32>
    %15 = vector.broadcast %14 : vector<1x128xf32> to vector<32x128xf32>
    %16 = arith.addf %13, %15 : vector<32x128xf32>
    %17 = arith.truncf %6 : vector<32x128xf32> to vector<32x128xbf16>
    %18 = arith.truncf %11 : vector<32x128xf32> to vector<32x128xbf16>
    %19 = arith.truncf %16 : vector<32x128xf32> to vector<32x128xbf16>
    %20 = vector.extract_strided_slice %17 {offsets = [0, 0], sizes = [16, 32], strides = [1, 1]} : vector<32x128xbf16> to vector<16x32xbf16>
    %21 = vector.extract_strided_slice %18 {offsets = [0, 0], sizes = [16, 32], strides = [1, 1]} : vector<32x128xbf16> to vector<16x32xbf16>
    %22 = vector.extract_strided_slice %19 {offsets = [0, 0], sizes = [16, 32], strides = [1, 1]} : vector<32x128xbf16> to vector<16x32xbf16>
    %cst_15 = arith.constant dense<0.000000e+00> : vector<16x16xf32>
    %23 = tpu.matmul %20, %21, %cst_15 {dimension_numbers = #tpu.dot_dimension_numbers<[1], [1], [0], [0], [0, 0, 1, 0], [], []>} : vector<16x32xbf16>, vector<16x32xbf16>, vector<16x16xf32> -> vector<16x16xf32>
    %cst_16 = arith.constant dense<0xFF800000> : vector<16xf32>
    %24 = vector.multi_reduction <maximumf>, %23, %cst_16 [1] : vector<16x16xf32> to vector<16xf32>
    %25 = vector.shape_cast %24 : vector<16xf32> to vector<16x1xf32>
    %26 = vector.broadcast %25 : vector<16x1xf32> to vector<16x16xf32>
    %27 = arith.subf %23, %26 : vector<16x16xf32>
    %28 = math.exp %27 : vector<16x16xf32>
    %cst_17 = arith.constant dense<0.000000e+00> : vector<16xf32>
    %29 = vector.multi_reduction <add>, %28, %cst_17 [1] : vector<16x16xf32> to vector<16xf32>
    %30 = vector.shape_cast %29 : vector<16xf32> to vector<16x1xf32>
    %31 = tpu.reciprocal %30 {approx = true} : vector<16x1xf32> -> vector<16x1xf32>
    %32 = vector.broadcast %31 : vector<16x1xf32> to vector<16x16xf32>
    %33 = arith.mulf %28, %32 : vector<16x16xf32>
    %34 = arith.truncf %33 : vector<16x16xf32> to vector<16x16xbf16>
    %cst_18 = arith.constant dense<0.000000e+00> : vector<16x32xf32>
    %35 = tpu.matmul %34, %22, %cst_18 {dimension_numbers = #tpu.dot_dimension_numbers<[1], [0], [0], [1], [0, 0, 1, 1], [], []>} : vector<16x16xbf16>, vector<16x32xbf16>, vector<16x32xf32> -> vector<16x32xf32>
    %c0_19 = arith.constant 0 : index
    %c0_20 = arith.constant 0 : index
    %36 = vector.load %arg19[%c0_19, %c0_20] : memref<32x128xf32, #tpu.memory_space<vmem>>, vector<16x32xf32>
    tpu.vector_store %arg19[%c0_19, %c0_20], %35 {strides = array<i32>} : memref<32x128xf32, #tpu.memory_space<vmem>>, vector<16x32xf32>,
    %37 = vector.extract_strided_slice %17 {offsets = [0, 32], sizes = [16, 32], strides = [1, 1]} : vector<32x128xbf16> to vector<16x32xbf16>
    %38 = vector.extract_strided_slice %18 {offsets = [0, 32], sizes = [16, 32], strides = [1, 1]} : vector<32x128xbf16> to vector<16x32xbf16>
    %39 = vector.extract_strided_slice %19 {offsets = [0, 32], sizes = [16, 32], strides = [1, 1]} : vector<32x128xbf16> to vector<16x32xbf16>
    %cst_21 = arith.constant dense<0.000000e+00> : vector<16x16xf32>
    %40 = tpu.matmul %37, %38, %cst_21 {dimension_numbers = #tpu.dot_dimension_numbers<[1], [1], [0], [0], [0, 0, 1, 0], [], []>} : vector<16x32xbf16>, vector<16x32xbf16>, vector<16x16xf32> -> vector<16x16xf32>
    %cst_22 = arith.constant dense<0xFF800000> : vector<16xf32>
    %41 = vector.multi_reduction <maximumf>, %40, %cst_22 [1] : vector<16x16xf32> to vector<16xf32>
    %42 = vector.shape_cast %41 : vector<16xf32> to vector<16x1xf32>
    %43 = vector.broadcast %42 : vector<16x1xf32> to vector<16x16xf32>
    %44 = arith.subf %40, %43 : vector<16x16xf32>
    %45 = math.exp %44 : vector<16x16xf32>
    %cst_23 = arith.constant dense<0.000000e+00> : vector<16xf32>
    %46 = vector.multi_reduction <add>, %45, %cst_23 [1] : vector<16x16xf32> to vector<16xf32>
    %47 = vector.shape_cast %46 : vector<16xf32> to vector<16x1xf32>
    %48 = tpu.reciprocal %47 {approx = true} : vector<16x1xf32> -> vector<16x1xf32>
    %49 = vector.broadcast %48 : vector<16x1xf32> to vector<16x16xf32>
    %50 = arith.mulf %45, %49 : vector<16x16xf32>
    %51 = arith.truncf %50 : vector<16x16xf32> to vector<16x16xbf16>
    %cst_24 = arith.constant dense<0.000000e+00> : vector<16x32xf32>
    %52 = tpu.matmul %51, %39, %cst_24 {dimension_numbers = #tpu.dot_dimension_numbers<[1], [0], [0], [1], [0, 0, 1, 1], [], []>} : vector<16x16xbf16>, vector<16x32xbf16>, vector<16x32xf32> -> vector<16x32xf32>
    %c0_25 = arith.constant 0 : index
    %c32 = arith.constant 32 : index
    %53 = vector.load %arg19[%c0_25, %c32] : memref<32x128xf32, #tpu.memory_space<vmem>>, vector<16x32xf32>
    tpu.vector_store %arg19[%c0_25, %c32], %52 {strides = array<i32>} : memref<32x128xf32, #tpu.memory_space<vmem>>, vector<16x32xf32>,
    %54 = vector.extract_strided_slice %17 {offsets = [0, 64], sizes = [16, 32], strides = [1, 1]} : vector<32x128xbf16> to vector<16x32xbf16>
    %55 = vector.extract_strided_slice %18 {offsets = [0, 64], sizes = [16, 32], strides = [1, 1]} : vector<32x128xbf16> to vector<16x32xbf16>
    %56 = vector.extract_strided_slice %19 {offsets = [0, 64], sizes = [16, 32], strides = [1, 1]} : vector<32x128xbf16> to vector<16x32xbf16>
    %cst_26 = arith.constant dense<0.000000e+00> : vector<16x16xf32>
    %57 = tpu.matmul %54, %55, %cst_26 {dimension_numbers = #tpu.dot_dimension_numbers<[1], [1], [0], [0], [0, 0, 1, 0], [], []>} : vector<16x32xbf16>, vector<16x32xbf16>, vector<16x16xf32> -> vector<16x16xf32>
    %cst_27 = arith.constant dense<0xFF800000> : vector<16xf32>
    %58 = vector.multi_reduction <maximumf>, %57, %cst_27 [1] : vector<16x16xf32> to vector<16xf32>
    %59 = vector.shape_cast %58 : vector<16xf32> to vector<16x1xf32>
    %60 = vector.broadcast %59 : vector<16x1xf32> to vector<16x16xf32>
    %61 = arith.subf %57, %60 : vector<16x16xf32>
    %62 = math.exp %61 : vector<16x16xf32>
    %cst_28 = arith.constant dense<0.000000e+00> : vector<16xf32>
    %63 = vector.multi_reduction <add>, %62, %cst_28 [1] : vector<16x16xf32> to vector<16xf32>
    %64 = vector.shape_cast %63 : vector<16xf32> to vector<16x1xf32>
    %65 = tpu.reciprocal %64 {approx = true} : vector<16x1xf32> -> vector<16x1xf32>
    %66 = vector.broadcast %65 : vector<16x1xf32> to vector<16x16xf32>
    %67 = arith.mulf %62, %66 : vector<16x16xf32>
    %68 = arith.truncf %67 : vector<16x16xf32> to vector<16x16xbf16>
    %cst_29 = arith.constant dense<0.000000e+00> : vector<16x32xf32>
    %69 = tpu.matmul %68, %56, %cst_29 {dimension_numbers = #tpu.dot_dimension_numbers<[1], [0], [0], [1], [0, 0, 1, 1], [], []>} : vector<16x16xbf16>, vector<16x32xbf16>, vector<16x32xf32> -> vector<16x32xf32>
    %c0_30 = arith.constant 0 : index
    %c64 = arith.constant 64 : index
    %70 = vector.load %arg19[%c0_30, %c64] : memref<32x128xf32, #tpu.memory_space<vmem>>, vector<16x32xf32>
    tpu.vector_store %arg19[%c0_30, %c64], %69 {strides = array<i32>} : memref<32x128xf32, #tpu.memory_space<vmem>>, vector<16x32xf32>,
    %71 = vector.extract_strided_slice %17 {offsets = [0, 96], sizes = [16, 32], strides = [1, 1]} : vector<32x128xbf16> to vector<16x32xbf16>
    %72 = vector.extract_strided_slice %18 {offsets = [0, 96], sizes = [16, 32], strides = [1, 1]} : vector<32x128xbf16> to vector<16x32xbf16>
    %73 = vector.extract_strided_slice %19 {offsets = [0, 96], sizes = [16, 32], strides = [1, 1]} : vector<32x128xbf16> to vector<16x32xbf16>
    %cst_31 = arith.constant dense<0.000000e+00> : vector<16x16xf32>
    %74 = tpu.matmul %71, %72, %cst_31 {dimension_numbers = #tpu.dot_dimension_numbers<[1], [1], [0], [0], [0, 0, 1, 0], [], []>} : vector<16x32xbf16>, vector<16x32xbf16>, vector<16x16xf32> -> vector<16x16xf32>
    %cst_32 = arith.constant dense<0xFF800000> : vector<16xf32>
    %75 = vector.multi_reduction <maximumf>, %74, %cst_32 [1] : vector<16x16xf32> to vector<16xf32>
    %76 = vector.shape_cast %75 : vector<16xf32> to vector<16x1xf32>
    %77 = vector.broadcast %76 : vector<16x1xf32> to vector<16x16xf32>
    %78 = arith.subf %74, %77 : vector<16x16xf32>
    %79 = math.exp %78 : vector<16x16xf32>
    %cst_33 = arith.constant dense<0.000000e+00> : vector<16xf32>
    %80 = vector.multi_reduction <add>, %79, %cst_33 [1] : vector<16x16xf32> to vector<16xf32>
    %81 = vector.shape_cast %80 : vector<16xf32> to vector<16x1xf32>
    %82 = tpu.reciprocal %81 {approx = true} : vector<16x1xf32> -> vector<16x1xf32>
    %83 = vector.broadcast %82 : vector<16x1xf32> to vector<16x16xf32>
    %84 = arith.mulf %79, %83 : vector<16x16xf32>
    %85 = arith.truncf %84 : vector<16x16xf32> to vector<16x16xbf16>
    %cst_34 = arith.constant dense<0.000000e+00> : vector<16x32xf32>
    %86 = tpu.matmul %85, %73, %cst_34 {dimension_numbers = #tpu.dot_dimension_numbers<[1], [0], [0], [1], [0, 0, 1, 1], [], []>} : vector<16x16xbf16>, vector<16x32xbf16>, vector<16x32xf32> -> vector<16x32xf32>
    %c0_35 = arith.constant 0 : index
    %c96 = arith.constant 96 : index
    %87 = vector.load %arg19[%c0_35, %c96] : memref<32x128xf32, #tpu.memory_space<vmem>>, vector<16x32xf32>
    tpu.vector_store %arg19[%c0_35, %c96], %86 {strides = array<i32>} : memref<32x128xf32, #tpu.memory_space<vmem>>, vector<16x32xf32>,
    %88 = vector.extract_strided_slice %17 {offsets = [16, 0], sizes = [16, 32], strides = [1, 1]} : vector<32x128xbf16> to vector<16x32xbf16>
    %89 = vector.extract_strided_slice %18 {offsets = [16, 0], sizes = [16, 32], strides = [1, 1]} : vector<32x128xbf16> to vector<16x32xbf16>
    %90 = vector.extract_strided_slice %19 {offsets = [16, 0], sizes = [16, 32], strides = [1, 1]} : vector<32x128xbf16> to vector<16x32xbf16>
    %cst_36 = arith.constant dense<0.000000e+00> : vector<16x16xf32>
    %91 = tpu.matmul %88, %89, %cst_36 {dimension_numbers = #tpu.dot_dimension_numbers<[1], [1], [0], [0], [0, 0, 1, 0], [], []>} : vector<16x32xbf16>, vector<16x32xbf16>, vector<16x16xf32> -> vector<16x16xf32>
    %cst_37 = arith.constant dense<0xFF800000> : vector<16xf32>
    %92 = vector.multi_reduction <maximumf>, %91, %cst_37 [1] : vector<16x16xf32> to vector<16xf32>
    %93 = vector.shape_cast %92 : vector<16xf32> to vector<16x1xf32>
    %94 = vector.broadcast %93 : vector<16x1xf32> to vector<16x16xf32>
    %95 = arith.subf %91, %94 : vector<16x16xf32>
    %96 = math.exp %95 : vector<16x16xf32>
    %cst_38 = arith.constant dense<0.000000e+00> : vector<16xf32>
    %97 = vector.multi_reduction <add>, %96, %cst_38 [1] : vector<16x16xf32> to vector<16xf32>
    %98 = vector.shape_cast %97 : vector<16xf32> to vector<16x1xf32>
    %99 = tpu.reciprocal %98 {approx = true} : vector<16x1xf32> -> vector<16x1xf32>
    %100 = vector.broadcast %99 : vector<16x1xf32> to vector<16x16xf32>
    %101 = arith.mulf %96, %100 : vector<16x16xf32>
    %102 = arith.truncf %101 : vector<16x16xf32> to vector<16x16xbf16>
    %cst_39 = arith.constant dense<0.000000e+00> : vector<16x32xf32>
    %103 = tpu.matmul %102, %90, %cst_39 {dimension_numbers = #tpu.dot_dimension_numbers<[1], [0], [0], [1], [0, 0, 1, 1], [], []>} : vector<16x16xbf16>, vector<16x32xbf16>, vector<16x32xf32> -> vector<16x32xf32>
    %c16 = arith.constant 16 : index
    %c0_40 = arith.constant 0 : index
    %104 = vector.load %arg19[%c16, %c0_40] : memref<32x128xf32, #tpu.memory_space<vmem>>, vector<16x32xf32>
    tpu.vector_store %arg19[%c16, %c0_40], %103 {strides = array<i32>} : memref<32x128xf32, #tpu.memory_space<vmem>>, vector<16x32xf32>,
    %105 = vector.extract_strided_slice %17 {offsets = [16, 32], sizes = [16, 32], strides = [1, 1]} : vector<32x128xbf16> to vector<16x32xbf16>
    %106 = vector.extract_strided_slice %18 {offsets = [16, 32], sizes = [16, 32], strides = [1, 1]} : vector<32x128xbf16> to vector<16x32xbf16>
    %107 = vector.extract_strided_slice %19 {offsets = [16, 32], sizes = [16, 32], strides = [1, 1]} : vector<32x128xbf16> to vector<16x32xbf16>
    %cst_41 = arith.constant dense<0.000000e+00> : vector<16x16xf32>
    %108 = tpu.matmul %105, %106, %cst_41 {dimension_numbers = #tpu.dot_dimension_numbers<[1], [1], [0], [0], [0, 0, 1, 0], [], []>} : vector<16x32xbf16>, vector<16x32xbf16>, vector<16x16xf32> -> vector<16x16xf32>
    %cst_42 = arith.constant dense<0xFF800000> : vector<16xf32>
    %109 = vector.multi_reduction <maximumf>, %108, %cst_42 [1] : vector<16x16xf32> to vector<16xf32>
    %110 = vector.shape_cast %109 : vector<16xf32> to vector<16x1xf32>
    %111 = vector.broadcast %110 : vector<16x1xf32> to vector<16x16xf32>
    %112 = arith.subf %108, %111 : vector<16x16xf32>
    %113 = math.exp %112 : vector<16x16xf32>
    %cst_43 = arith.constant dense<0.000000e+00> : vector<16xf32>
    %114 = vector.multi_reduction <add>, %113, %cst_43 [1] : vector<16x16xf32> to vector<16xf32>
    %115 = vector.shape_cast %114 : vector<16xf32> to vector<16x1xf32>
    %116 = tpu.reciprocal %115 {approx = true} : vector<16x1xf32> -> vector<16x1xf32>
    %117 = vector.broadcast %116 : vector<16x1xf32> to vector<16x16xf32>
    %118 = arith.mulf %113, %117 : vector<16x16xf32>
    %119 = arith.truncf %118 : vector<16x16xf32> to vector<16x16xbf16>
    %cst_44 = arith.constant dense<0.000000e+00> : vector<16x32xf32>
    %120 = tpu.matmul %119, %107, %cst_44 {dimension_numbers = #tpu.dot_dimension_numbers<[1], [0], [0], [1], [0, 0, 1, 1], [], []>} : vector<16x16xbf16>, vector<16x32xbf16>, vector<16x32xf32> -> vector<16x32xf32>
    %c16_45 = arith.constant 16 : index
    %c32_46 = arith.constant 32 : index
    %121 = vector.load %arg19[%c16_45, %c32_46] : memref<32x128xf32, #tpu.memory_space<vmem>>, vector<16x32xf32>
    tpu.vector_store %arg19[%c16_45, %c32_46], %120 {strides = array<i32>} : memref<32x128xf32, #tpu.memory_space<vmem>>, vector<16x32xf32>,
    %122 = vector.extract_strided_slice %17 {offsets = [16, 64], sizes = [16, 32], strides = [1, 1]} : vector<32x128xbf16> to vector<16x32xbf16>
    %123 = vector.extract_strided_slice %18 {offsets = [16, 64], sizes = [16, 32], strides = [1, 1]} : vector<32x128xbf16> to vector<16x32xbf16>
    %124 = vector.extract_strided_slice %19 {offsets = [16, 64], sizes = [16, 32], strides = [1, 1]} : vector<32x128xbf16> to vector<16x32xbf16>
    %cst_47 = arith.constant dense<0.000000e+00> : vector<16x16xf32>
    %125 = tpu.matmul %122, %123, %cst_47 {dimension_numbers = #tpu.dot_dimension_numbers<[1], [1], [0], [0], [0, 0, 1, 0], [], []>} : vector<16x32xbf16>, vector<16x32xbf16>, vector<16x16xf32> -> vector<16x16xf32>
    %cst_48 = arith.constant dense<0xFF800000> : vector<16xf32>
    %126 = vector.multi_reduction <maximumf>, %125, %cst_48 [1] : vector<16x16xf32> to vector<16xf32>
    %127 = vector.shape_cast %126 : vector<16xf32> to vector<16x1xf32>
    %128 = vector.broadcast %127 : vector<16x1xf32> to vector<16x16xf32>
    %129 = arith.subf %125, %128 : vector<16x16xf32>
    %130 = math.exp %129 : vector<16x16xf32>
    %cst_49 = arith.constant dense<0.000000e+00> : vector<16xf32>
    %131 = vector.multi_reduction <add>, %130, %cst_49 [1] : vector<16x16xf32> to vector<16xf32>
    %132 = vector.shape_cast %131 : vector<16xf32> to vector<16x1xf32>
    %133 = tpu.reciprocal %132 {approx = true} : vector<16x1xf32> -> vector<16x1xf32>
    %134 = vector.broadcast %133 : vector<16x1xf32> to vector<16x16xf32>
    %135 = arith.mulf %130, %134 : vector<16x16xf32>
    %136 = arith.truncf %135 : vector<16x16xf32> to vector<16x16xbf16>
    %cst_50 = arith.constant dense<0.000000e+00> : vector<16x32xf32>
    %137 = tpu.matmul %136, %124, %cst_50 {dimension_numbers = #tpu.dot_dimension_numbers<[1], [0], [0], [1], [0, 0, 1, 1], [], []>} : vector<16x16xbf16>, vector<16x32xbf16>, vector<16x32xf32> -> vector<16x32xf32>
    %c16_51 = arith.constant 16 : index
    %c64_52 = arith.constant 64 : index
    %138 = vector.load %arg19[%c16_51, %c64_52] : memref<32x128xf32, #tpu.memory_space<vmem>>, vector<16x32xf32>
    tpu.vector_store %arg19[%c16_51, %c64_52], %137 {strides = array<i32>} : memref<32x128xf32, #tpu.memory_space<vmem>>, vector<16x32xf32>,
    %139 = vector.extract_strided_slice %17 {offsets = [16, 96], sizes = [16, 32], strides = [1, 1]} : vector<32x128xbf16> to vector<16x32xbf16>
    %140 = vector.extract_strided_slice %18 {offsets = [16, 96], sizes = [16, 32], strides = [1, 1]} : vector<32x128xbf16> to vector<16x32xbf16>
    %141 = vector.extract_strided_slice %19 {offsets = [16, 96], sizes = [16, 32], strides = [1, 1]} : vector<32x128xbf16> to vector<16x32xbf16>
    %cst_53 = arith.constant dense<0.000000e+00> : vector<16x16xf32>
    %142 = tpu.matmul %139, %140, %cst_53 {dimension_numbers = #tpu.dot_dimension_numbers<[1], [1], [0], [0], [0, 0, 1, 0], [], []>} : vector<16x32xbf16>, vector<16x32xbf16>, vector<16x16xf32> -> vector<16x16xf32>
    %cst_54 = arith.constant dense<0xFF800000> : vector<16xf32>
    %143 = vector.multi_reduction <maximumf>, %142, %cst_54 [1] : vector<16x16xf32> to vector<16xf32>
    %144 = vector.shape_cast %143 : vector<16xf32> to vector<16x1xf32>
    %145 = vector.broadcast %144 : vector<16x1xf32> to vector<16x16xf32>
    %146 = arith.subf %142, %145 : vector<16x16xf32>
    %147 = math.exp %146 : vector<16x16xf32>
    %cst_55 = arith.constant dense<0.000000e+00> : vector<16xf32>
    %148 = vector.multi_reduction <add>, %147, %cst_55 [1] : vector<16x16xf32> to vector<16xf32>
    %149 = vector.shape_cast %148 : vector<16xf32> to vector<16x1xf32>
    %150 = tpu.reciprocal %149 {approx = true} : vector<16x1xf32> -> vector<16x1xf32>
    %151 = vector.broadcast %150 : vector<16x1xf32> to vector<16x16xf32>
    %152 = arith.mulf %147, %151 : vector<16x16xf32>
    %153 = arith.truncf %152 : vector<16x16xf32> to vector<16x16xbf16>
    %cst_56 = arith.constant dense<0.000000e+00> : vector<16x32xf32>
    %154 = tpu.matmul %153, %141, %cst_56 {dimension_numbers = #tpu.dot_dimension_numbers<[1], [0], [0], [1], [0, 0, 1, 1], [], []>} : vector<16x16xbf16>, vector<16x32xbf16>, vector<16x32xf32> -> vector<16x32xf32>
    %c16_57 = arith.constant 16 : index
    %c96_58 = arith.constant 96 : index
    %155 = vector.load %arg19[%c16_57, %c96_58] : memref<32x128xf32, #tpu.memory_space<vmem>>, vector<16x32xf32>
    tpu.vector_store %arg19[%c16_57, %c96_58], %154 {strides = array<i32>} : memref<32x128xf32, #tpu.memory_space<vmem>>, vector<16x32xf32>,
    %c0_59 = arith.constant 0 : index
    %c0_60 = arith.constant 0 : index
    %156 = vector.load %arg19[%c0_59, %c0_60] : memref<32x128xf32, #tpu.memory_space<vmem>>, vector<32x128xf32>
    %157 = arith.truncf %156 : vector<32x128xf32> to vector<32x128xbf16>
    %c0_61 = arith.constant 0 : index
    %c0_62 = arith.constant 0 : index
    %158 = vector.load %arg8[%c0_61, %c0_62] : memref<128x128xbf16, #tpu.memory_space<vmem>>, vector<128x128xbf16>
    %cst_63 = arith.constant dense<0.000000e+00> : vector<32x128xf32>
    %159 = tpu.matmul %157, %158, %cst_63 {dimension_numbers = #tpu.dot_dimension_numbers<[1], [0], [0], [1], [0, 0, 1, 1], [], []>} : vector<32x128xbf16>, vector<128x128xbf16>, vector<32x128xf32> -> vector<32x128xf32>
    %c0_64 = arith.constant 0 : index
    %c0_65 = arith.constant 0 : index
    %160 = vector.load %arg9[%c0_64, %c0_65] : memref<1x128xf32, #tpu.memory_space<vmem>>, vector<1x128xf32>
    %161 = vector.broadcast %160 : vector<1x128xf32> to vector<32x128xf32>
    %162 = arith.addf %159, %161 : vector<32x128xf32>
    %163 = arith.addf %0, %162 : vector<32x128xf32>
    %c0_66 = arith.constant 0 : index
    %c0_67 = arith.constant 0 : index
    %164 = vector.load %arg14[%c0_66, %c0_67] : memref<1x128xf32, #tpu.memory_space<vmem>>, vector<1x128xf32>
    %c0_68 = arith.constant 0 : index
    %c0_69 = arith.constant 0 : index
    %165 = vector.load %arg15[%c0_68, %c0_69] : memref<1x128xf32, #tpu.memory_space<vmem>>, vector<1x128xf32>
    %cst_70 = arith.constant dense<0.000000e+00> : vector<32xf32>
    %166 = vector.multi_reduction <add>, %163, %cst_70 [1] : vector<32x128xf32> to vector<32xf32>
    %167 = vector.shape_cast %166 : vector<32xf32> to vector<32x1xf32>
    %cst_71 = arith.constant 1.280000e+02 : f32
    %168 = vector.broadcast %cst_71 : f32 to vector<32x1xf32>
    %169 = arith.divf %167, %168 : vector<32x1xf32>
    %170 = vector.broadcast %169 : vector<32x1xf32> to vector<32x128xf32>
    %171 = arith.subf %163, %170 : vector<32x128xf32>
    %172 = vector.broadcast %169 : vector<32x1xf32> to vector<32x128xf32>
    %173 = arith.subf %163, %172 : vector<32x128xf32>
    %174 = arith.mulf %171, %173 : vector<32x128xf32>
    %cst_72 = arith.constant dense<0.000000e+00> : vector<32xf32>
    %175 = vector.multi_reduction <add>, %174, %cst_72 [1] : vector<32x128xf32> to vector<32xf32>
    %176 = vector.shape_cast %175 : vector<32xf32> to vector<32x1xf32>
    %cst_73 = arith.constant 1.280000e+02 : f32
    %177 = vector.broadcast %cst_73 : f32 to vector<32x1xf32>
    %178 = arith.divf %176, %177 : vector<32x1xf32>
    %179 = vector.broadcast %169 : vector<32x1xf32> to vector<32x128xf32>
    %180 = arith.subf %163, %179 : vector<32x128xf32>
    %cst_74 = arith.constant 9.99999974E-6 : f32
    %181 = vector.broadcast %cst_74 : f32 to vector<32x1xf32>
    %182 = arith.addf %178, %181 : vector<32x1xf32>
    %183 = math.rsqrt %182 : vector<32x1xf32>
    %184 = vector.broadcast %183 : vector<32x1xf32> to vector<32x128xf32>
    %185 = arith.mulf %180, %184 : vector<32x128xf32>
    %186 = vector.broadcast %164 : vector<1x128xf32> to vector<32x128xf32>
    %187 = arith.mulf %185, %186 : vector<32x128xf32>
    %188 = vector.broadcast %165 : vector<1x128xf32> to vector<32x128xf32>
    %189 = arith.addf %187, %188 : vector<32x128xf32>
    %190 = arith.truncf %189 : vector<32x128xf32> to vector<32x128xbf16>
    %c0_75 = arith.constant 0 : index
    %c0_76 = arith.constant 0 : index
    %191 = vector.load %arg10[%c0_75, %c0_76] : memref<128x256xbf16, #tpu.memory_space<vmem>>, vector<128x256xbf16>
    %cst_77 = arith.constant dense<0.000000e+00> : vector<32x256xf32>
    %192 = tpu.matmul %190, %191, %cst_77 {dimension_numbers = #tpu.dot_dimension_numbers<[1], [0], [0], [1], [0, 0, 1, 1], [], []>} : vector<32x128xbf16>, vector<128x256xbf16>, vector<32x256xf32> -> vector<32x256xf32>
    %c0_78 = arith.constant 0 : index
    %c0_79 = arith.constant 0 : index
    %193 = vector.load %arg11[%c0_78, %c0_79] : memref<1x256xf32, #tpu.memory_space<vmem>>, vector<1x256xf32>
    %194 = vector.broadcast %193 : vector<1x256xf32> to vector<32x256xf32>
    %195 = arith.addf %192, %194 : vector<32x256xf32>
    %cst_80 = arith.constant 0.000000e+00 : f32
    %196 = vector.broadcast %cst_80 : f32 to vector<32x256xf32>
    %197 = arith.maximumf %195, %196 : vector<32x256xf32>
    %198 = arith.truncf %197 : vector<32x256xf32> to vector<32x256xbf16>
    %c0_81 = arith.constant 0 : index
    %c0_82 = arith.constant 0 : index
    %199 = vector.load %arg12[%c0_81, %c0_82] : memref<256x128xbf16, #tpu.memory_space<vmem>>, vector<256x128xbf16>
    %cst_83 = arith.constant dense<0.000000e+00> : vector<32x128xf32>
    %200 = tpu.matmul %198, %199, %cst_83 {dimension_numbers = #tpu.dot_dimension_numbers<[1], [0], [0], [1], [0, 0, 1, 1], [], []>} : vector<32x256xbf16>, vector<256x128xbf16>, vector<32x128xf32> -> vector<32x128xf32>
    %c0_84 = arith.constant 0 : index
    %c0_85 = arith.constant 0 : index
    %201 = vector.load %arg13[%c0_84, %c0_85] : memref<1x128xf32, #tpu.memory_space<vmem>>, vector<1x128xf32>
    %202 = vector.broadcast %201 : vector<1x128xf32> to vector<32x128xf32>
    %203 = arith.addf %200, %202 : vector<32x128xf32>
    %204 = arith.addf %189, %203 : vector<32x128xf32>
    %c0_86 = arith.constant 0 : index
    %c0_87 = arith.constant 0 : index
    %205 = vector.load %arg16[%c0_86, %c0_87] : memref<1x128xf32, #tpu.memory_space<vmem>>, vector<1x128xf32>
    %c0_88 = arith.constant 0 : index
    %c0_89 = arith.constant 0 : index
    %206 = vector.load %arg17[%c0_88, %c0_89] : memref<1x128xf32, #tpu.memory_space<vmem>>, vector<1x128xf32>
    %cst_90 = arith.constant dense<0.000000e+00> : vector<32xf32>
    %207 = vector.multi_reduction <add>, %204, %cst_90 [1] : vector<32x128xf32> to vector<32xf32>
    %208 = vector.shape_cast %207 : vector<32xf32> to vector<32x1xf32>
    %cst_91 = arith.constant 1.280000e+02 : f32
    %209 = vector.broadcast %cst_91 : f32 to vector<32x1xf32>
    %210 = arith.divf %208, %209 : vector<32x1xf32>
    %211 = vector.broadcast %210 : vector<32x1xf32> to vector<32x128xf32>
    %212 = arith.subf %204, %211 : vector<32x128xf32>
    %213 = vector.broadcast %210 : vector<32x1xf32> to vector<32x128xf32>
    %214 = arith.subf %204, %213 : vector<32x128xf32>
    %215 = arith.mulf %212, %214 : vector<32x128xf32>
    %cst_92 = arith.constant dense<0.000000e+00> : vector<32xf32>
    %216 = vector.multi_reduction <add>, %215, %cst_92 [1] : vector<32x128xf32> to vector<32xf32>
    %217 = vector.shape_cast %216 : vector<32xf32> to vector<32x1xf32>
    %cst_93 = arith.constant 1.280000e+02 : f32
    %218 = vector.broadcast %cst_93 : f32 to vector<32x1xf32>
    %219 = arith.divf %217, %218 : vector<32x1xf32>
    %220 = vector.broadcast %210 : vector<32x1xf32> to vector<32x128xf32>
    %221 = arith.subf %204, %220 : vector<32x128xf32>
    %cst_94 = arith.constant 9.99999974E-6 : f32
    %222 = vector.broadcast %cst_94 : f32 to vector<32x1xf32>
    %223 = arith.addf %219, %222 : vector<32x1xf32>
    %224 = math.rsqrt %223 : vector<32x1xf32>
    %225 = vector.broadcast %224 : vector<32x1xf32> to vector<32x128xf32>
    %226 = arith.mulf %221, %225 : vector<32x128xf32>
    %227 = vector.broadcast %205 : vector<1x128xf32> to vector<32x128xf32>
    %228 = arith.mulf %226, %227 : vector<32x128xf32>
    %229 = vector.broadcast %206 : vector<1x128xf32> to vector<32x128xf32>
    %230 = arith.addf %228, %229 : vector<32x128xf32>
    %c0_95 = arith.constant 0 : index
    %c0_96 = arith.constant 0 : index
    %231 = vector.load %arg18[%c0_95, %c0_96] : memref<32x128xf32, #tpu.memory_space<vmem>>, vector<32x128xf32>
    tpu.vector_store %arg18[%c0_95, %c0_96], %230 {strides = array<i32>} : memref<32x128xf32, #tpu.memory_space<vmem>>, vector<32x128xf32>,
    return
  }
  func.func @transform_0(%arg0: i32) -> (i32, i32) {
    %c0_i32 = arith.constant 0 : i32
    %c0_i32_0 = arith.constant 0 : i32
    return %arg0, %c0_i32 : i32, i32
  }
  func.func @transform_1(%arg0: i32) -> (i32, i32) {
    %c0_i32 = arith.constant 0 : i32
    %c0_i32_0 = arith.constant 0 : i32
    %c0_i32_1 = arith.constant 0 : i32
    return %c0_i32, %c0_i32_0 : i32, i32
  }
  func.func @transform_2(%arg0: i32) -> (i32, i32) {
    %c0_i32 = arith.constant 0 : i32
    %c0_i32_0 = arith.constant 0 : i32
    %c0_i32_1 = arith.constant 0 : i32
    return %c0_i32, %c0_i32_0 : i32, i32
  }
  func.func @transform_3(%arg0: i32) -> (i32, i32) {
    %c0_i32 = arith.constant 0 : i32
    %c0_i32_0 = arith.constant 0 : i32
    %c0_i32_1 = arith.constant 0 : i32
    return %c0_i32, %c0_i32_0 : i32, i32
  }
  func.func @transform_4(%arg0: i32) -> (i32, i32) {
    %c0_i32 = arith.constant 0 : i32
    %c0_i32_0 = arith.constant 0 : i32
    %c0_i32_1 = arith.constant 0 : i32
    return %c0_i32, %c0_i32_0 : i32, i32
  }
  func.func @transform_5(%arg0: i32) -> (i32, i32) {
    %c0_i32 = arith.constant 0 : i32
    %c0_i32_0 = arith.constant 0 : i32
    %c0_i32_1 = arith.constant 0 : i32
    return %c0_i32, %c0_i32_0 : i32, i32
  }
  func.func @transform_6(%arg0: i32) -> (i32, i32) {
    %c0_i32 = arith.constant 0 : i32
    %c0_i32_0 = arith.constant 0 : i32
    %c0_i32_1 = arith.constant 0 : i32
    return %c0_i32, %c0_i32_0 : i32, i32
  }
  func.func @transform_7(%arg0: i32) -> (i32, i32) {
    %c0_i32 = arith.constant 0 : i32
    %c0_i32_0 = arith.constant 0 : i32
    %c0_i32_1 = arith.constant 0 : i32
    return %c0_i32, %c0_i32_0 : i32, i32
  }
  func.func @transform_8(%arg0: i32) -> (i32, i32) {
    %c0_i32 = arith.constant 0 : i32
    %c0_i32_0 = arith.constant 0 : i32
    %c0_i32_1 = arith.constant 0 : i32
    return %c0_i32, %c0_i32_0 : i32, i32
  }
  func.func @transform_9(%arg0: i32) -> (i32, i32) {
    %c0_i32 = arith.constant 0 : i32
    %c0_i32_0 = arith.constant 0 : i32
    %c0_i32_1 = arith.constant 0 : i32
    return %c0_i32, %c0_i32_0 : i32, i32
  }
  func.func @transform_10(%arg0: i32) -> (i32, i32) {
    %c0_i32 = arith.constant 0 : i32
    %c0_i32_0 = arith.constant 0 : i32
    %c0_i32_1 = arith.constant 0 : i32
    return %c0_i32, %c0_i32_0 : i32, i32
  }
  func.func @transform_11(%arg0: i32) -> (i32, i32) {
    %c0_i32 = arith.constant 0 : i32
    %c0_i32_0 = arith.constant 0 : i32
    %c0_i32_1 = arith.constant 0 : i32
    return %c0_i32, %c0_i32_0 : i32, i32
  }
  func.func @transform_12(%arg0: i32) -> (i32, i32) {
    %c0_i32 = arith.constant 0 : i32
    %c0_i32_0 = arith.constant 0 : i32
    %c0_i32_1 = arith.constant 0 : i32
    return %c0_i32, %c0_i32_0 : i32, i32
  }
  func.func @transform_13(%arg0: i32) -> (i32, i32) {
    %c0_i32 = arith.constant 0 : i32
    %c0_i32_0 = arith.constant 0 : i32
    %c0_i32_1 = arith.constant 0 : i32
    return %c0_i32, %c0_i32_0 : i32, i32
  }
  func.func @transform_14(%arg0: i32) -> (i32, i32) {
    %c0_i32 = arith.constant 0 : i32
    %c0_i32_0 = arith.constant 0 : i32
    %c0_i32_1 = arith.constant 0 : i32
    return %c0_i32, %c0_i32_0 : i32, i32
  }
  func.func @transform_15(%arg0: i32) -> (i32, i32) {
    %c0_i32 = arith.constant 0 : i32
    %c0_i32_0 = arith.constant 0 : i32
    %c0_i32_1 = arith.constant 0 : i32
    return %c0_i32, %c0_i32_0 : i32, i32
  }
  func.func @transform_16(%arg0: i32) -> (i32, i32) {
    %c0_i32 = arith.constant 0 : i32
    %c0_i32_0 = arith.constant 0 : i32
    %c0_i32_1 = arith.constant 0 : i32
    return %c0_i32, %c0_i32_0 : i32, i32
  }
  func.func @transform_17(%arg0: i32) -> (i32, i32) {
    %c0_i32 = arith.constant 0 : i32
    %c0_i32_0 = arith.constant 0 : i32
    return %arg0, %c0_i32 : i32, i32
  }
}

</mosaic_0001>

<bundles_post_ra>
// kernel: tpu_custom_call.1
= control target key start
LH: loop header
LB: loop body
LE: loop exit
PB: predicated region body
PF: predicated region fallthrough
CT: control target
= control target key end

     0   :  { %s4564_s0 = inlined_call_operand.hbm [shape: f32[64,128], index: 0, kind: input, shape index: {}]   ;;  %s4565_s1 = inlined_call_operand.hbm [shape: bf16[128,128], index: 1, kind: input, shape index: {}]   ;;  %s4566_s2 = inlined_call_operand.hbm [shape: bf16[128,128], index: 2, kind: input, shape index: {}]   ;;  %s4567_s3 = inlined_call_operand.hbm [shape: bf16[128,128], index: 3, kind: input, shape index: {}]   ;;  %s4568_s4 = inlined_call_operand.vmem [shape: f32[1,128], index: 4, kind: input, shape index: {}]   ;;  %s4569_s5 = inlined_call_operand.vmem [shape: f32[1,128], index: 5, kind: input, shape index: {}]   ;;  %s4570_s6 = inlined_call_operand.vmem [shape: f32[1,128], index: 6, kind: input, shape index: {}]   ;;  %s4571_s7 = inlined_call_operand.hbm [shape: bf16[128,128], index: 7, kind: input, shape index: {}]   ;;  %s4572_s8 = inlined_call_operand.vmem [shape: f32[1,128], index: 8, kind: input, shape index: {}]   ;;  %s4573_s9 = inlined_call_operand.hbm [shape: bf16[128,256], index: 9, kind: input, shape index: {}]   ;;  %s4574_s10 = inlined_call_operand.vmem [shape: f32[1,256], index: 10, kind: input, shape index: {}]   ;;  %s4575_s11 = inlined_call_operand.hbm [shape: bf16[256,128], index: 11, kind: input, shape index: {}]   ;;  %s4576_s12 = inlined_call_operand.vmem [shape: f32[1,128], index: 12, kind: input, shape index: {}]   ;;  %s4577_s13 = inlined_call_operand.vmem [shape: f32[1,128], index: 13, kind: input, shape index: {}]   ;;  %s4578_s14 = inlined_call_operand.vmem [shape: f32[1,128], index: 14, kind: input, shape index: {}]   ;;  %s4579_s15 = inlined_call_operand.vmem [shape: f32[1,128], index: 15, kind: input, shape index: {}]   ;;  %s4580_s16 = inlined_call_operand.vmem [shape: f32[1,128], index: 16, kind: input, shape index: {}]   ;;  %s4581_s17 = inlined_call_operand.hbm [shape: f32[64,128], index: 17, kind: output, shape index: {}]  }
   0x1   :  { %4594 = sst [smem:[#allocation21_spill]] %s4564_s0 }
   0x2   :  { %4595 = sst [smem:[#allocation22_spill]] %s4565_s1 }
   0x3   :  { %4596 = sst [smem:[#allocation23_spill]] %s4567_s3 }
   0x4   :  { %4597 = sst [smem:[#allocation24_spill]] %s4572_s8 }
   0x5   :  { %4598 = sst [smem:[#allocation25_spill]] %s4574_s10 }
   0x6   :  { %4599 = sst [smem:[#allocation26_spill]] %s4576_s12 }
   0x7   :  { %4600 = sst [smem:[#allocation27_spill]] %s4577_s13 }
   0x8   :  { %4601 = sst [smem:[#allocation28_spill]] %s4578_s14 }
   0x9   :  { %4602 = sst [smem:[#allocation29_spill]] %s4579_s15 }
   0xa   :  { %4603 = sst [smem:[#allocation30_spill]] %s4580_s16 }
   0xb   :  { %4604 = sst [smem:[#allocation31_spill]] %s4581_s17 }
   0xc   :  { %22 = vsyncpa [#allocation4], 0 }
   0xd   :  { %24 = vsyncpa [#allocation4 + $0x1], 0 }
   0xe   :  { %25 = vsyncpa [#allocation7], 0 }
   0xf   :  { %26 = vsyncpa [#allocation10], 0 }
  0x10   :  { %27 = vsyncpa [#allocation13], 0 }
  0x11   :  { %28 = vsyncpa [#allocation5], 0 }
  0x12   :  { %30 = vsyncpa [#allocation5 + $0x1], 0  ;;  %s3888_s24 = smov 0   ;;  %s3890_s25 = smov 0  }
  0x13   :  { %s3892_s26 = smov 0   ;;  %s3894_s27 = smov 0  }
  0x14 LB: > { %s3778_s28 = smov [#allocation6]   ;;  %s3909_s0 = sadd.s32 4294967295, %s3776_s27   ;;  %s3776_s27 = sphi %s3894_s27, %s4641_s27   ;;  %s3772_s26 = sphi %s3892_s26, %s4640_s26   ;;  %s3768_s25 = sphi %s3890_s25, %s4639_s25   ;;  %s3764_s24 = sphi %s3888_s24, %s4638_s24  }
  0x15   : > { %s441_s29 = sshll.u32 %s3778_s28, 4  ;;  %p2833_p0 = scmp.ge.s32.totalorder %s3776_s27, 1  ;;  %s3914_s29 = int_to_ptr.vmem [resolvable:$true] %s441_s29 }
  0x16   : > { %p4590_p1 = scmp.eq.s32.totalorder %s3909_s0, 0  ;;  %p429_p2 = scmp.lt.s32.totalorder %s3776_s27, 3 }
  0x17   : > { %s3779_s18 = smov [#allocation9]   ;;  %s3780_s20 = smov [#allocation12]  }
  0x18   : > { %p3916_p3 = pnand %p2833_p0, %p429_p2  ;;  %s467_s19 = sshll.u32 %s3779_s18, 4  ;;  %s3929_s19 = int_to_ptr.vmem [resolvable:$true] %s467_s19 }
  0x19   : > { %s505_s21 = sshll.u32 %s3780_s20, 4  ;;  %s4607_s28 = sld [smem:[#allocation22_spill]]  ;;  %s3931_s21 = int_to_ptr.vmem [resolvable:$true] %s505_s21 }
  0x1a   : > { %s4605_s30 = scalar_select %p3916_p3, 1, 0 }
  0x1b   : > { %p3253_p5 = pneg %p3916_p3 }
  0x1d   : > { %p3925_p6 = pnand %p3253_p5, %p4590_p1 }
  0x1f   : > { %s3500_s17 = scalar_lea.hbm %s4607_s28, 1024  ;;  %p3941_p8 = pneg %p3925_p6 }
  0x20   : > { %p3501_p7 = scmp.ne.s32.totalorder %s4607_s28, %s3500_s17  ;;  %p3507_p11 = scmp.lt.u32.totalorder %s3500_s17, %s4607_s28 }
  0x22   : > { %p3503_p9 = pnand %p3941_p8, %p3501_p7 }
  0x24   : > { %p3504_p10 = pneg %p3503_p9 }
  0x26   : > { %p3509_p12 = pnand %p3507_p11, %p3504_p10 }
  0x28   : > { %3512 = shalt.err (!%p3509_p12)
}
  0x29   : > { %s3513_s15 = scalar_lea.vmem %s3914_s29, 1024  ;;  %p3521_p5 = scmp.lt.s32.totalorder %s3914_s29, %s3914_s29 }
  0x2a   : > { %p3514_p13 = scmp.ne.s32.totalorder %s3914_s29, %s3513_s15  ;;  %p3522_p4 = scmp.lt.s32.totalorder %s3513_s15, %s3513_s15 }
  0x2c   : > { %p3516_p0 = pnand %p3514_p13, %p3941_p8  ;;  %p3523_p7 = por %p3522_p4, %p3521_p5 }
  0x2e   : > { %p3517_p2 = pneg %p3516_p0 }
  0x30   : > { %p3524_p9 = pnand %p3523_p7, %p3517_p2 }
  0x32   : > { %3527 = shalt.err (!%p3524_p9)
}
  0x33   : > { %s4585_s16 = smov 64   ;;  %s4587_s12 = smov 4  }
  0x34   : > { %3256 = dma.hbm_to_vmem [thread:$0]  (!%p3925_p6), %s4607_s28, 1024, %s3914_s29, [#allocation7], %s4585_s16, %s4585_s16, %s4587_s12  }
  0x35   : > { %s4609_s3 = sld [smem:[#allocation23_spill]] }
  0x3b   : > { %s3528_s15 = scalar_lea.hbm %s4609_s3, 1024 }
  0x3c   : > { %p3529_p4 = scmp.ne.s32.totalorder %s4609_s3, %s3528_s15  ;;  %p3535_p12 = scmp.lt.u32.totalorder %s3528_s15, %s4609_s3 }
  0x3e   : > { %p3531_p10 = pnand %p3529_p4, %p3941_p8 }
  0x40   : > { %p3532_p11 = pneg %p3531_p10 }
  0x42   : > { %p3537_p13 = pnand %p3535_p12, %p3532_p11 }
  0x44   : > { %3540 = shalt.err (!%p3537_p13)
}
  0x45   : > { %s3541_s29 = scalar_lea.vmem %s3929_s19, 1024  ;;  %p3549_p7 = scmp.lt.s32.totalorder %s3929_s19, %s3929_s19 }
  0x46   : > { %p3542_p0 = scmp.ne.s32.totalorder %s3929_s19, %s3541_s29  ;;  %p3550_p9 = scmp.lt.s32.totalorder %s3541_s29, %s3541_s29 }
  0x48   : > { %p3544_p2 = pnand %p3542_p0, %p3941_p8  ;;  %p3551_p4 = por %p3550_p9, %p3549_p7 }
  0x4a   : > { %p3545_p5 = pneg %p3544_p2 }
  0x4c   : > { %p3552_p10 = pnand %p3551_p4, %p3545_p5 }
  0x4e   : > { %3555 = shalt.err (!%p3552_p10)
}
  0x4f   : > { %3262 = dma.hbm_to_vmem [thread:$0]  (!%p3925_p6), %s4609_s3, 1024, %s3929_s19, [#allocation10], %s4585_s16, %s4585_s16, %s4587_s12  }
  0x50   : > { %s3556_s17 = scalar_lea.hbm %s4573_s9, 2048 }
  0x51   : > { %p3557_p11 = scmp.ne.s32.totalorder %s4573_s9, %s3556_s17  ;;  %p3563_p0 = scmp.lt.u32.totalorder %s3556_s17, %s4573_s9 }
  0x53   : > { %p3559_p12 = pnand %p3557_p11, %p3941_p8 }
  0x55   : > { %p3560_p13 = pneg %p3559_p12 }
  0x57   : > { %p3565_p2 = pnand %p3563_p0, %p3560_p13 }
  0x59   : > { %3568 = shalt.err (!%p3565_p2)
}
  0x5a   : > { %s3569_s19 = scalar_lea.vmem %s3931_s21, 2048  ;;  %p3577_p4 = scmp.lt.s32.totalorder %s3931_s21, %s3931_s21 }
  0x5b   : > { %p3570_p5 = scmp.ne.s32.totalorder %s3931_s21, %s3569_s19  ;;  %p3578_p10 = scmp.lt.s32.totalorder %s3569_s19, %s3569_s19 }
  0x5d   : > { %p3572_p7 = pnand %p3570_p5, %p3941_p8  ;;  %p3579_p11 = por %p3578_p10, %p3577_p4 }
  0x5f   : > { %p3573_p9 = pneg %p3572_p7 }
  0x61   : > { %p3580_p12 = pnand %p3579_p11, %p3573_p9 }
  0x63   : > { %3583 = shalt.err (!%p3580_p12)
}
  0x64   : > { %s4592_s29 = smov 128   ;;  %s3784_s8 = smov 8  }
  0x65   : > { %3268 = dma.hbm_to_vmem [thread:$0]  (!%p3925_p6), %s4573_s9, 2048, %s3931_s21, [#allocation13], %s4592_s29, %s4592_s29, %s3784_s8  }
  0x66   : > { %s3785_s14 = smov [#allocation8]   ;;  %s3786_s22 = smov [#allocation11]  }
  0x67   : > { %s454_s17 = sshll.u32 %s3785_s14, 4  ;;  %s489_s23 = sshll.u32 %s3786_s22, 4  ;;  %s455_s17 = int_to_ptr.vmem [resolvable:$true] %s454_s17  ;;  %s490_s23 = int_to_ptr.vmem [resolvable:$true] %s489_s23 }
  0x68   : > { %s3584_s19 = scalar_lea.hbm %s4566_s2, 1024 }
  0x69   : > { %p3585_p13 = scmp.ne.s32.totalorder %s4566_s2, %s3584_s19  ;;  %p3591_p5 = scmp.lt.u32.totalorder %s3584_s19, %s4566_s2 }
  0x6b   : > { %p3587_p0 = pnand %p3585_p13, %p3941_p8 }
  0x6d   : > { %p3588_p2 = pneg %p3587_p0 }
  0x6f   : > { %p3593_p7 = pnand %p3591_p5, %p3588_p2 }
  0x71   : > { %3596 = shalt.err (!%p3593_p7)
}
  0x72   : > { %s3597_s21 = scalar_lea.vmem %s455_s17, 1024  ;;  %p3605_p11 = scmp.lt.s32.totalorder %s455_s17, %s455_s17 }
  0x73   : > { %p3598_p9 = scmp.ne.s32.totalorder %s455_s17, %s3597_s21  ;;  %p3606_p12 = scmp.lt.s32.totalorder %s3597_s21, %s3597_s21 }
  0x75   : > { %p3600_p4 = pnand %p3598_p9, %p3941_p8  ;;  %p3607_p1 = por %p3606_p12, %p3605_p11 }
  0x77   : > { %p3601_p10 = pneg %p3600_p4 }
  0x79   : > { %p3608_p3 = pnand %p3607_p1, %p3601_p10 }
  0x7b   : > { %3611 = shalt.err (!%p3608_p3)
}
  0x7c   : > { %s4610_s16 = smov 4   ;;  %s4611_s12 = smov 64  }
  0x7d   : > { %3259 = dma.hbm_to_vmem [thread:$0]  (!%p3925_p6), %s4566_s2, 1024, %s455_s17, [#allocation7], %s4611_s12, %s4611_s12, %s4610_s16  }
  0x7e   : > { %s3612_s14 = scalar_lea.hbm %s4571_s7, 1024 }
  0x7f   : > { %p3613_p1 = scmp.ne.s32.totalorder %s4571_s7, %s3612_s14  ;;  %p3619_p0 = scmp.lt.u32.totalorder %s3612_s14, %s4571_s7 }
  0x81   : > { %p3615_p3 = pnand %p3613_p1, %p3941_p8 }
  0x83   : > { %p3616_p13 = pneg %p3615_p3 }
  0x85   : > { %p3621_p2 = pnand %p3619_p0, %p3616_p13 }
  0x87   : > { %3624 = shalt.err (!%p3621_p2)
}
  0x88   : > { %s3625_s21 = scalar_lea.vmem %s490_s23, 1024  ;;  %p3633_p4 = scmp.lt.s32.totalorder %s490_s23, %s490_s23 }
  0x89   : > { %p3626_p5 = scmp.ne.s32.totalorder %s490_s23, %s3625_s21  ;;  %p3634_p10 = scmp.lt.s32.totalorder %s3625_s21, %s3625_s21 }
  0x8b   : > { %p3628_p7 = pnand %p3626_p5, %p3941_p8  ;;  %p3635_p11 = por %p3634_p10, %p3633_p4 }
  0x8d   : > { %p3629_p9 = pneg %p3628_p7 }
  0x8f   : > { %p3636_p12 = pnand %p3635_p11, %p3629_p9 }
  0x91   : > { %3639 = shalt.err (!%p3636_p12)
}
  0x92   : > { %3265 = dma.hbm_to_vmem [thread:$0]  (!%p3925_p6), %s4571_s7, 1024, %s490_s23, [#allocation10], %s4611_s12, %s4611_s12, %s4610_s16  }
  0x93   : > { %s3787_s28 = smov [#allocation14]   ;;  %s3640_s22 = scalar_lea.hbm %s4575_s11, 2048 }
  0x94   : > { %s521_s10 = sshll.u32 %s3787_s28, 4  ;;  %p3641_p1 = scmp.ne.s32.totalorder %s4575_s11, %s3640_s22  ;;  %s522_s10 = int_to_ptr.vmem [resolvable:$true] %s521_s10 }
  0x95   : > { %p3647_p0 = scmp.lt.u32.totalorder %s3640_s22, %s4575_s11 }
  0x96   : > { %p3643_p3 = pnand %p3641_p1, %p3941_p8 }
  0x98   : > { %p3644_p13 = pneg %p3643_p3 }
  0x9a   : > { %p3649_p2 = pnand %p3647_p0, %p3644_p13 }
  0x9c   : > { %3652 = shalt.err (!%p3649_p2)
}
  0x9d   : > { %s3653_s23 = scalar_lea.vmem %s522_s10, 2048  ;;  %p3661_p4 = scmp.lt.s32.totalorder %s522_s10, %s522_s10 }
  0x9e   : > { %p3654_p5 = scmp.ne.s32.totalorder %s522_s10, %s3653_s23  ;;  %p3662_p10 = scmp.lt.s32.totalorder %s3653_s23, %s3653_s23 }
  0xa0   : > { %p3656_p7 = pnand %p3654_p5, %p3941_p8  ;;  %p3663_p11 = por %p3662_p10, %p3661_p4 }
  0xa2   : > { %p3657_p9 = pneg %p3656_p7 }
  0xa4   : > { %p3664_p12 = pnand %p3663_p11, %p3657_p9 }
  0xa6   : > { %3667 = shalt.err (!%p3664_p12)
}
  0xa7   : > { %3271 = dma.hbm_to_vmem [thread:$0]  (!%p3925_p6), %s4575_s11, 2048, %s522_s10, [#allocation13], %s4611_s12, %s4611_s12, %s4610_s16  }
  0xa8   : > { %s2832_s1 = sadd.s32 4294967294, %s3776_s27   ;;  %s4082_s18 = sadd.s32 1, %s3776_s27  }
  0xa9   : > { %s40_s28 = ssub.s32 %s3776_s27, %s4082_s18  ;;  %s43_s13 = sadd.s32 1, %s3772_s26 }
  0xaa   : > { %p41_p8 = scmp.eq.s32.totalorder %s40_s28, 0  ;;  %p50_p1 = scmp.ne.s32.totalorder %s3772_s26, %s3768_s25 }
  0xab   : > { %p51_p3 = scmp.eq.s32.totalorder %s3776_s27, 0  ;;  %p56_p13 = scmp.ne.s32.totalorder %s3768_s25, %s3764_s24 }
  0xac   : > { %s4093_s14 = scalar_select %p41_p8, %s3772_s26, %s43_s13  }
  0xad   : > { %p4095_p0 = por %p51_p3, %p50_p1  ;;  %p4613_p2 = scmp.eq.s32.totalorder %s3909_s0, 0 }
  0xae   : > { %p416_p5 = scmp.eq.s32.totalorder %s3909_s0, 1  ;;  %p422_p7 = scmp.eq.s32.totalorder %s2832_s1, 1 }
  0xaf   : > { %p4101_p6 = por %p4613_p2, %p56_p13  ;;  %p3286_p9 = scmp.lt.s32.totalorder %s3776_s27, 2 }
  0xb0   : > { %s550_s12 = sand.u32 1, %s3772_s26   ;;  %p4108_p4 = por %p416_p5, %p50_p1 }
  0xb1   : > { %p4112_p10 = por %p422_p7, %p56_p13  ;;  %s2841_s15 = sshll.u32 %s550_s12, 5 }
  0xb2   : > { %s4615_s10 = scalar_select %p4108_p4, 1, 0 }
  0xb3   : > { %s4616_s20 = scalar_select %p4112_p10, 1, 0 }
  0xb4   : > { %s2947_s19 = sshll.u32 %s3776_s27, 9  ;;  %s4617_s17 = sld [smem:[#allocation21_spill]] }
  0xb5   : > { %s554_s1 = scalar_lea.vmem [#allocation3], %s2841_s15  ;;  %p4126_p11 = pnand %p3286_p9, %p4095_p0 }
  0xb6   : > { %s561_s28 = sshll.u32 %s554_s1, 4  ;;  %s4130_s29 = scalar_lea.sflag [#allocation4], %s550_s12  ;;  %s4122_s28 = int_to_ptr.vmem [resolvable:$true] %s561_s28 }
  0xb7   : > { %p3670_p8 = pneg %p4126_p11 }
  0xba   : > { %s4120_s3 = scalar_lea.hbm %s4617_s17, %s2947_s19  ;;  %s3673_s22 = scalar_lea.hbm %s4617_s17, 1024 }
  0xbb   : > { %s3668_s21 = scalar_lea.hbm %s4120_s3, 512  ;;  %p3674_p13 = scmp.lt.u32.totalorder %s4120_s3, %s4617_s17 }
  0xbc   : > { %p3669_p12 = scmp.ne.s32.totalorder %s4120_s3, %s3668_s21  ;;  %p3675_p0 = scmp.lt.u32.totalorder %s3673_s22, %s3668_s21 }
  0xbd   : > { %p3677_p5 = scmp.lt.u32.totalorder %s3668_s21, %s4120_s3 }
  0xbe   : > { %p3671_p1 = pnand %p3670_p8, %p3669_p12  ;;  %p3676_p2 = por %p3675_p0, %p3674_p13 }
  0xc0   : > { %p3672_p3 = pneg %p3671_p1  ;;  %p3678_p7 = por %p3677_p5, %p3676_p2 }
  0xc2   : > { %p3679_p9 = pnand %p3678_p7, %p3672_p3 }
  0xc4   : > { %3682 = shalt.err (!%p3679_p9)
}
  0xc5   : > { %s3683_s12 = scalar_lea.vmem %s4122_s28, 512  ;;  %s3788_s15 = smov [#allocation3]  }
  0xc6   : > { %p3684_p12 = scmp.ne.s32.totalorder %s4122_s28, %s3683_s12  ;;  %s3688_s19 = sshll.u32 %s3788_s15, 4  ;;  %s3689_s19 = int_to_ptr.vmem [resolvable:$false] %s3688_s19 }
  0xc7   : > { %s3690_s23 = scalar_lea.vmem %s3689_s19, 1024  ;;  %p3691_p4 = scmp.lt.s32.totalorder %s4122_s28, %s3689_s19 }
  0xc8   : > { %p3686_p1 = pnand %p3684_p12, %p3670_p8  ;;  %p3692_p13 = scmp.lt.s32.totalorder %s3690_s23, %s3683_s12 }
  0xca   : > { %p3687_p10 = pneg %p3686_p1  ;;  %p3693_p0 = por %p3692_p13, %p3691_p4 }
  0xcc   : > { %p3694_p2 = pnand %p3693_p0, %p3687_p10 }
  0xce   : > { %3697 = shalt.err (!%p3694_p2)
}
  0xcf   : > { %s4619_s21 = smov 128   ;;  %p4620_p8 = scmp.ne.s32.totalorder %s4605_s30, 0 }
  0xd0   : > { %3275 = dma.hbm_to_vmem [thread:$0]  (!%p4126_p11), %s4120_s3, 512, %s4122_s28, %s4130_s29, %s4619_s21, %s4619_s21, %s3784_s8  }
  0xd1   : > { %573 = sbr.rel (%p4620_p8) target bundleno = 4334 (0x10ee), region = 88  ;;  %s4164_s22 = sand.u32 (!%p4620_p8), 1, %s3768_s25  }
  0xd2   : > { %s2845_s1 = sshll.u32 (!%p4620_p8), %s4164_s22, 5  ;;  %s576_s12 = scalar_lea.sflag (!%p4620_p8), [#allocation4], %s4164_s22 }
  0xd3   : > { %s4170_s13 = scalar_lea.vmem (!%p4620_p8), [#allocation3], %s2845_s1 }
  0xd8   : > { %3743 = dma.done.wait (%p4101_p6), %s576_s12, 512  }
  0xd9   : > { %3745 = vsyncadd (%p4101_p6), %s576_s12, 4294966784  ;;  %p4621_p4 = scmp.eq.s32.totalorder %s3909_s0, 0 }
  0xdb   : > { %3747 = dma.done.wait (%p4621_p4), [#allocation7], 2048   ;;  %p4622_p10 = pmov %p4621_p4 }
  0xdc   : > { %p4623_p11 = pmov %p4621_p4 }
  0xdd   : > { %3749 = vsyncadd (%p4622_p10), [#allocation7], 4294965248 }
  0xde   : > { %3751 = dma.done.wait (%p4623_p11), [#allocation10], 2048   ;;  %p4624_p3 = pmov %p4621_p4 }
  0xe0   : > { %3753 = vsyncadd (%p4624_p3), [#allocation10], 4294965248  ;;  %p4625_p5 = pmov %p4624_p3 }
  0xe1   : > { %p4626_p7 = pmov %p4624_p3 }
  0xe2   : > { %3755 = dma.done.wait (%p4625_p5), [#allocation13], 4096  }
  0xe3   : > { %3757 = vsyncadd (%p4626_p7), [#allocation13], 4294963200  ;;  %v3344_v0 = vld [vmem:[#allocation8] sm:$0xff]   ;;  %v3345_v1 = vld [vmem:[#allocation8 + $0x8] sm:$0xff]   ;;  %v3789_v30 = vmov 0.0   ;;  %vm3790_vm0 = vmmov 0  }
  0xe4   : > { %3069 = vmatprep.subr.bf16.mxu1 %v3344_v0  ;;  %v3346_v2 = vld [vmem:[#allocation6] sm:$0xff]   ;;  %v3347_v3 = vld [vmem:[#allocation8 + $0x10] sm:$0xff]   ;;  %v3348_v4 = vld [vmem:[#allocation6 + $0x8] sm:$0xff]   ;;  %vm1029_vm1 = vcmask 261120   ;;  %vm1077_vm2 = vcmask 130048   ;;  %s3791_s15 = smov 96  }
  0xe5   : > { %3070 = vmatpush3.bf16.msra.mxu1 %v3344_v0  ;;  %3049 = vmatprep.subr.bf16.mxu0 %v3346_v2  ;;  %v3350_v5 = vld [vmem:[#allocation6 + $0x10] sm:$0xff]   ;;  %v3349_v6 = vld [vmem:[#allocation8 + $0x18] sm:$0xff]   ;;  %v3351_v8 = vld [vmem:[#allocation8 + $0x20] sm:$0xff]   ;;  %s3792_s19 = smov 64   ;;  %s3793_s23 = smov 32   ;;  %vm1279_vm3 = vcmask 523520  }
  0xe6   : > { %3071 = vmatprep.subr.bf16.mxu1 %v3345_v1  ;;  %3050 = vmatpush3.bf16.msra.mxu0 %v3346_v2  ;;  %v3352_v7 = vld [vmem:[#allocation6 + $0x18] sm:$0xff]   ;;  %v3354_v9 = vld [vmem:[#allocation6 + $0x20] sm:$0xff]   ;;  %v658_v11 = vld [vmem:[%s4170_s13 + $0x8] sm:$0xff]  ;;  %vm1411_vm4 = vcmask 785920   ;;  %vm1543_vm5 = vcmask 1048320   ;;  %s4627_s30 = sld [smem:[#allocation24_spill]] }
  0xe7   : > { %3051 = vmatprep.subr.bf16.mxu0 %v3348_v4  ;;  %v657_v10 = vld [vmem:[%s4170_s13] sm:$0xff]  ;;  %v3353_v12 = vld [vmem:[#allocation8 + $0x28] sm:$0xff]   ;;  %v3355_v15 = vld [vmem:[#allocation8 + $0x30] sm:$0xff]   ;;  %s4628_s8 = sld [smem:[#allocation27_spill]]  ;;  %s4629_s28 = sld [smem:[#allocation28_spill]] }
  0xe8   : > { %v661_v13 = vpack.c.bf16 %v658_v11, %v657_v10  ;;  %v3356_v14 = vld [vmem:[#allocation6 + $0x28] sm:$0xff]   ;;  %v3358_v16 = vld [vmem:[#allocation6 + $0x30] sm:$0xff]   ;;  %v3357_v17 = vld [vmem:[#allocation8 + $0x38] sm:$0xff]   ;;  %p4635_p9 = scmp.ne.s32.totalorder %s4615_s10, 0 }
  0xe9   : > { %3072 = vmatpush3.bf16.msra.mxu1 %v3345_v1  ;;  %v659_v18 = vld [vmem:[%s4170_s13 + $0x10] sm:$0xff]  ;;  %v660_v19 = vld [vmem:[%s4170_s13 + $0x18] sm:$0xff]  ;;  %v3360_v21 = vld [vmem:[#allocation9] sm:$0xff]  }
  0xea   : > { %3073 = vmatprep.subr.bf16.mxu1 %v3347_v3  ;;  %3052 = vmatpush3.bf16.msra.mxu0 %v3348_v4  ;;  %v3359_v20 = vld [vmem:[#allocation6 + $0x38] sm:$0xff]   ;;  %v662_v22 = vpack.c.bf16 %v660_v19, %v659_v18  ;;  %v3361_v23 = vld [vmem:[#allocation9 + $0x8] sm:$0xff]   ;;  %v3362_v24 = vld [vmem:[#allocation9 + $0x10] sm:$0xff]  }
  0xeb   : > { %3053 = vmatprep.subr.bf16.mxu0 %v3350_v5  ;;  %3085 = vmatprep.mubr.bf16.mxu1 %v661_v13  ;;  %v3363_v25 = vld [vmem:[#allocation9 + $0x18] sm:$0xff]   ;;  %v3364_v26 = vld [vmem:[#allocation9 + $0x20] sm:$0xff]   ;;  %v3365_v27 = vld [vmem:[#allocation9 + $0x28] sm:$0xff]  }
  0xec   : > { %3065 = vmatprep.mubr.bf16.mxu0 %v661_v13  ;;  %v3366_v28 = vld [vmem:[#allocation9 + $0x30] sm:$0xff]   ;;  %v3367_v29 = vld [vmem:[#allocation9 + $0x38] sm:$0xff]   ;;  %v2862_v32 = vld [vmem:[%s4569_s5] ss:$0 sm:$0xff] }
  0xed   : > { %3074 = vmatpush3.bf16.msra.mxu1 %v3347_v3  ;;  %v2853_v33 = vld [vmem:[%s4568_s4] ss:$0 sm:$0xff] }
  0xee   : > { %3075 = vmatprep.subr.bf16.mxu1 %v3349_v6  ;;  %3054 = vmatpush3.bf16.msra.mxu0 %v3350_v5  ;;  %v2871_v55 = vld [vmem:[%s4570_s6] ss:$0 sm:$0xff] }
  0xef   : > { %3055 = vmatprep.subr.bf16.mxu0 %v3352_v7 }
  0xf1   : > { %3076 = vmatpush3.bf16.msra.mxu1 %v3349_v6 }
  0xf2   : > { %3077 = vmatprep.subr.bf16.mxu1 %v3351_v8  ;;  %3056 = vmatpush3.bf16.msra.mxu0 %v3352_v7 }
  0xf3   : > { %3057 = vmatprep.subr.bf16.mxu0 %v3354_v9 }
  0xf5   : > { %3078 = vmatpush3.bf16.msra.mxu1 %v3351_v8 }
  0xf6   : > { %3079 = vmatprep.subr.bf16.mxu1 %v3353_v12  ;;  %3058 = vmatpush3.bf16.msra.mxu0 %v3354_v9 }
  0xf7   : > { %3059 = vmatprep.subr.bf16.mxu0 %v3356_v14 }
  0xf9   : > { %3080 = vmatpush3.bf16.msra.mxu1 %v3353_v12 }
  0xfa   : > { %3081 = vmatprep.subr.bf16.mxu1 %v3355_v15  ;;  %3060 = vmatpush3.bf16.msra.mxu0 %v3356_v14 }
  0xfb   : > { %3061 = vmatprep.subr.bf16.mxu0 %v3358_v16 }
  0xfd   : > { %3082 = vmatpush3.bf16.msra.mxu1 %v3355_v15 }
  0xfe   : > { %3083 = vmatprep.subr.bf16.mxu1 %v3357_v17  ;;  %3062 = vmatpush3.bf16.msra.mxu0 %v3358_v16 }
  0xff   : > { %3063 = vmatprep.subr.bf16.mxu0 %v3359_v20 }
 0x101   : > { %3084 = vmatpush3.bf16.msra.mxu1 %v3357_v17 }
 0x102   : > { %3064 = vmatpush3.bf16.msra.mxu0 %v3359_v20  ;;  %3109 = vmatprep.subr.bf16.mxu1 %v3789_v30 }
 0x103   : > { %3089 = vmatprep.subr.bf16.mxu0 %v3360_v21 }
 0x104   : > { %3086 = vmatmul.mubr.bf16.vlgmr.msra.gmra.mrb[0].mxu1 %v662_v22 }
 0x105   : > { %3066 = vmatmul.mubr.bf16.vlgmr.msra.gmra.mrb[0].mxu0 %v662_v22  ;;  %3111 = vmatprep.mubr.msk.bf16.mxu1 %vm3790_vm0, %v3789_v30 }
 0x106   : > { %3090 = vmatpush3.bf16.msra.mxu0 %v3360_v21  ;;  %3105 = vmatprep.mubr.bf16.mxu0 %v661_v13 }
 0x107   : > { %3091 = vmatprep.subr.bf16.mxu0 %v3361_v23 }
 0x10a   : > { %3092 = vmatpush3.bf16.msra.mxu0 %v3361_v23 }
 0x10b   : > { %3093 = vmatprep.subr.bf16.mxu0 %v3362_v24 }
 0x10e   : > { %3094 = vmatpush3.bf16.msra.mxu0 %v3362_v24 }
 0x10f   : > { %3095 = vmatprep.subr.bf16.mxu0 %v3363_v25 }
 0x112   : > { %3096 = vmatpush3.bf16.msra.mxu0 %v3363_v25 }
 0x113   : > { %3097 = vmatprep.subr.bf16.mxu0 %v3364_v26 }
 0x116   : > { %3098 = vmatpush3.bf16.msra.mxu0 %v3364_v26 }
 0x117   : > { %3099 = vmatprep.subr.bf16.mxu0 %v3365_v27 }
 0x11a   : > { %3100 = vmatpush3.bf16.msra.mxu0 %v3365_v27 }
 0x11b   : > { %3101 = vmatprep.subr.bf16.mxu0 %v3366_v28 }
 0x11e   : > { %3102 = vmatpush3.bf16.msra.mxu0 %v3366_v28 }
 0x11f   : > { %3103 = vmatprep.subr.bf16.mxu0 %v3367_v29 }
 0x122   : > { %3104 = vmatpush3.bf16.msra.mxu0 %v3367_v29 }
 0x123   : > { %3157 = vmatprep.subr.bf16.mxu0 %v3789_v30 }
 0x125   : > { %3106 = vmatmul.mubr.bf16.vlgmr.msra.gmra.mrb[4].mxu0 %v662_v22 }
 0x126   : > { %3159 = vmatprep.mubr.msk.bf16.mxu0 %vm3790_vm0, %v3789_v30 }
 0x1d7   : > { %v3087_v31 = vpop.f32.mrb[0].mxu1 }
 0x1d8   : > { %v888_v34 = vpop.f32.mrb[1].mxu1  ;;  %v3067_v36 = vpop.f32.mrb[0].mxu0  ;;  %v897_v37 = vadd.f32 %v3087_v31, %v2862_v32 }
 0x1d9   : > { %v3088_v35 = vpop.f32.mrb[2].mxu1  ;;  %v777_v40 = vadd.f32 %v3067_v36, %v2853_v33  ;;  %v768_v41 = vpop.f32.mrb[1].mxu0  ;;  %v889_v42 = vadd.f32 %v2862_v32, %v888_v34 }
 0x1da   : > { %v900_v38 = vadd.f32 %v3088_v35, %v2862_v32  ;;  %v891_v39 = vpop.f32.mrb[3].mxu1  ;;  %v769_v44 = vadd.f32 %v2853_v33, %v768_v41  ;;  %v3068_v45 = vpop.f32.mrb[2].mxu0 }
 0x1db   : > { %v892_v43 = vadd.f32 %v2862_v32, %v891_v39  ;;  %v780_v47 = vadd.f32 %v3068_v45, %v2853_v33  ;;  %v771_v48 = vpop.f32.mrb[3].mxu0 }
 0x1dc   : > { %v4204_v46 = vpack.c.bf16 %v900_v38, %v897_v37  ;;  %v772_v50 = vadd.f32 %v2853_v33, %v771_v48 }
 0x1dd   : > { %v4206_v49 = vpack.c.bf16 %v892_v43, %v889_v42  ;;  %v4208_v51 = vpack.c.bf16 %v780_v47, %v777_v40 }
 0x1de   : > { %v1550_v52 = vsel %vm1029_vm1, %v4204_v46, 0  ;;  %v4212_v53 = vpack.c.bf16 %v772_v50, %v769_v44 }
 0x1df   : > { %3158 = vmatpush3.bf16.xpose.msra.mxu0 %v1550_v52  ;;  %v1034_v54 = vsel %vm1029_vm1, %v4206_v49, 0 }
 0x1e0   : > { %3110 = vmatpush3.bf16.xpose.msra.mxu1 %v1034_v54  ;;  %3169 = vmatprep.subr.bf16.mxu0 %v3789_v30 }
 0x1e1   : > { %3115 = vmatprep.subr.bf16.mxu1 %v3789_v30 }
 0x1e6   : > { %3160 = vmatmul.mubr.msk.bf16.vlgmr.msra.gmra.mrb[8].mxu0 %vm1029_vm1, %v4208_v51 }
 0x1e7   : > { %3112 = vmatmul.mubr.msk.bf16.vlgmr.msra.gmra.mrb[4].mxu1 %vm1029_vm1, %v4212_v53  ;;  %3171 = vmatprep.mubr.msk.bf16.mxu0 %vm3790_vm0, %v3789_v30 }
 0x1e8   : > { %3117 = vmatprep.mubr.msk.bf16.mxu1 %vm3790_vm0, %v3789_v30 }
 0x1f8   : > { %v3107_v56 = vpop.f32.mrb[4].mxu0 }
 0x1f9   : > { %v1017_v57 = vadd.f32 %v3107_v56, %v2871_v55  ;;  %v1008_v58 = vpop.f32.mrb[5].mxu0 }
 0x1fa   : > { %v1009_v59 = vadd.f32 %v2871_v55, %v1008_v58  ;;  %v3108_v60 = vpop.f32.mrb[6].mxu0 }
 0x1fb   : > { %v1020_v61 = vadd.f32 %v3108_v60, %v2871_v55  ;;  %v1011_v62 = vpop.f32.mrb[7].mxu0 }
 0x1fc   : > { %v1012_v63 = vadd.f32 %v2871_v55, %v1011_v62 }
 0x1fd   : > { %v4229_v0 = vpack.c.bf16 %v1020_v61, %v1017_v57 }
 0x1fe   : > { %v4231_v1 = vpack.c.bf16 %v1012_v63, %v1009_v59 }
 0x200   : > { %3116 = vmatpush3.bf16.msra.mxu1 %v4231_v1 }
 0x201   : > { %3121 = vmatprep.subr.bf16.mxu1 %v3789_v30 }
 0x2b9   : > { %v4235_v2 = vpop.f32.mrb[8].mxu0 }
 0x2ba   : > { %v1070_v3 = vpop.f32.mrb[4].mxu1  ;;  %v3161_v4 = vpop.f32.mrb[9].mxu0 }
 0x2bb   : > { %v3113_v5 = vpop.f32.mrb[5].mxu1  ;;  %v4237_v6 = vpop.f32.mrb[10].mxu0  ;;  %v1078_v7 = vsel %vm1077_vm2, %v1070_v3, -inf }
 0x2bc   : > { %v3162_v8 = vpop.f32.mrb[11].mxu0  ;;  %1079 = vmax.xlane.f32.xlu0 %v1078_v7  ;;  %v1073_v9 = vpop.f32.mrb[6].mxu1 }
 0x2bd   : > { %v3114_v10 = vpop.f32.mrb[7].mxu1  ;;  %v1081_v11 = vsel %vm1077_vm2, %v1073_v9, -inf }
 0x2c0   : > { %1082 = vmax.xlane.f32.xlu0 %v1081_v11 }
 0x2d6   : > { %1151 = vrot.lane.b32.xlu0 %v4206_v49, %s3791_s15 }
 0x349   : > { %v1080_v12 = vpop.xlane.xlu0 %1079 }
 0x34a   : > { %v1084_v13 = vsub.f32 %v1070_v3, %v1080_v12 }
 0x34c   : > { %v1086_v14 = vmul.f32 1.442695, %v1084_v13 }
 0x34d   : > { %v1083_v15 = vpop.xlane.xlu0 %1082 }
 0x34e   : > { %3416 = vpow2.f32 %v1086_v14  ;;  %v1085_v16 = vsub.f32 %v1073_v9, %v1083_v15 }
 0x350   : > { %v1088_v17 = vmul.f32 1.442695, %v1085_v16 }
 0x351   : > { %v1152_v28 = vpop.permute.xlu0 %1151 }
 0x352   : > { %3418 = vpow2.f32 %v1088_v17  ;;  %v1157_v31 = vsel %vm1029_vm1, %v1152_v28, 0 }
 0x358   : > { %v3417_v18 = vpop.eup %3416 }
 0x359   : > { %v1090_v19 = vsel %vm1077_vm2, %v3417_v18, 0.0 }
 0x35a   : > { %1091 = vadd.xlane.f32.xlu1 %v1090_v19 }
 0x35c   : > { %v3419_v20 = vpop.eup %3418 }
 0x35d   : > { %v1093_v21 = vsel %vm1077_vm2, %v3419_v20, 0.0 }
 0x35e   : > { %1094 = vadd.xlane.f32.xlu1 %v1093_v21 }
 0x36f   : > { %1148 = vrot.lane.b32.xlu1 %v4212_v53, %s3791_s15 }
 0x3e7   : > { %v1092_v22 = vpop.xlane.xlu1 %1091 }
 0x3e8   : > { %3420 = vrcp.f32 %v1092_v22 }
 0x3eb   : > { %v1095_v23 = vpop.xlane.xlu1 %1094 }
 0x3ec   : > { %3422 = vrcp.f32 %v1095_v23 }
 0x3ef   : > { %v1149_v32 = vpop.permute.xlu1 %1148 }
 0x3f2   : > { %v3421_v24 = vpop.eup %3420 }
 0x3f3   : > { %v1098_v26 = vmul.f32 %v3421_v24, %v3417_v18 }
 0x3f6   : > { %v3423_v25 = vpop.eup %3422 }
 0x3f7   : > { %v1099_v27 = vmul.f32 %v3423_v25, %v3419_v20 }
 0x3f9   : > { %v1100_v29 = vpack.c.bf16 %v1099_v27, %v1098_v26 }
 0x3fb   : > { %3118 = vmatmul.mubr.msk.bf16.vlgmr.msra.gmra.mrb[8].mxu1 %vm1077_vm2, %v1100_v29 }
 0x3fc   : > { %3122 = vmatpush3.bf16.xpose.msra.mxu1 %v1157_v31  ;;  %3123 = vmatprep.mubr.msk.bf16.mxu1 %vm3790_vm0, %v3789_v30 }
 0x3fd   : > { %3127 = vmatprep.subr.bf16.mxu1 %v3789_v30 }
 0x403   : > { %3124 = vmatmul.mubr.msk.bf16.vlgmr.msra.gmra.mrb[12].mxu1 %vm1029_vm1, %v1149_v32 }
 0x404   : > { %3129 = vmatprep.mubr.msk.bf16.mxu1 %vm3790_vm0, %v3789_v30 }
 0x4ce   : > { %v1138_v33 = vpop.f32.mrb[8].mxu1 }
 0x4cf   : > { %1145 = vst.msk [vmem:[#allocation2] sm:$0xff] %vm1029_vm1, %v1138_v33  ;;  %v3119_v34 = vpop.f32.mrb[9].mxu1 }
 0x4d0   : > { %v1141_v35 = vpop.f32.mrb[10].mxu1 }
 0x4d1   : > { %1146 = vst.msk [vmem:[#allocation2 + $0x8] sm:$0xff] %vm1029_vm1, %v1141_v35  ;;  %v3120_v36 = vpop.f32.mrb[11].mxu1 }
 0x4d6   : > { %v1193_v37 = vpop.f32.mrb[12].mxu1 }
 0x4d7   : > { %v3125_v38 = vpop.f32.mrb[13].mxu1  ;;  %v1200_v39 = vsel %vm1077_vm2, %v1193_v37, -inf }
 0x4d8   : > { %1201 = vmax.xlane.f32.xlu1 %v1200_v39  ;;  %v1196_v40 = vpop.f32.mrb[14].mxu1 }
 0x4d9   : > { %v3126_v41 = vpop.f32.mrb[15].mxu1  ;;  %v1203_v42 = vsel %vm1077_vm2, %v1196_v40, -inf }
 0x4da   : > { %1204 = vmax.xlane.f32.xlu0 %v1203_v42 }
 0x565   : > { %v1202_v43 = vpop.xlane.xlu1 %1201 }
 0x566   : > { %v1206_v44 = vsub.f32 %v1193_v37, %v1202_v43 }
 0x567   : > { %v1205_v45 = vpop.xlane.xlu0 %1204 }
 0x568   : > { %v1208_v47 = vmul.f32 1.442695, %v1206_v44  ;;  %v1207_v48 = vsub.f32 %v1196_v40, %v1205_v45 }
 0x56a   : > { %3424 = vpow2.f32 %v1208_v47  ;;  %v1210_v50 = vmul.f32 1.442695, %v1207_v48 }
 0x56c   : > { %3426 = vpow2.f32 %v1210_v50 }
 0x574   : > { %v3425_v52 = vpop.eup %3424 }
 0x575   : > { %v1212_v54 = vsel %vm1077_vm2, %v3425_v52, 0.0 }
 0x576   : > { %v3427_v55 = vpop.eup %3426  ;;  %1213 = vadd.xlane.f32.xlu0 %v1212_v54 }
 0x577   : > { %v1215_v56 = vsel %vm1077_vm2, %v3427_v55, 0.0 }
 0x578   : > { %1216 = vadd.xlane.f32.xlu1 %v1215_v56 }
 0x589   : > { %1284 = vrot.lane.b32.xlu1 %v4206_v49, %s3792_s19 }
 0x58c   : > { %1224 = vrot.lane.b32.xlu0 %v4231_v1, %s3791_s15 }
 0x58d   : > { %1282 = vrot.lane.b32.xlu1 %v4212_v53, %s3792_s19 }
 0x603   : > { %v1214_v57 = vpop.xlane.xlu0 %1213 }
 0x604   : > { %3428 = vrcp.f32 %v1214_v57 }
 0x605   : > { %v1217_v58 = vpop.xlane.xlu1 %1216 }
 0x606   : > { %3430 = vrcp.f32 %v1217_v58 }
 0x607   : > { %v1225_v59 = vpop.permute.xlu0 %1224 }
 0x608   : > { %3128 = vmatpush3.bf16.msra.mxu1 %v1225_v59 }
 0x609   : > { %3133 = vmatprep.subr.bf16.mxu1 %v3789_v30  ;;  %v1285_v3 = vpop.permute.xlu1 %1284 }
 0x60a   : > { %v1290_v5 = vsel %vm1029_vm1, %v1285_v3, 0 }
 0x60d   : > { %v1283_v7 = vpop.permute.xlu1 %1282 }
 0x60e   : > { %v3429_v60 = vpop.eup %3428 }
 0x60f   : > { %v1220_v62 = vmul.f32 %v3429_v60, %v3425_v52 }
 0x610   : > { %v3431_v61 = vpop.eup %3430 }
 0x611   : > { %v1221_v63 = vmul.f32 %v3431_v61, %v3427_v55 }
 0x613   : > { %v1222_v4 = vpack.c.bf16 %v1221_v63, %v1220_v62 }
 0x615   : > { %3130 = vmatmul.mubr.msk.bf16.vlgmr.msra.gmra.mrb[16].mxu1 %vm1077_vm2, %v1222_v4 }
 0x616   : > { %3134 = vmatpush3.bf16.xpose.msra.mxu1 %v1290_v5  ;;  %3135 = vmatprep.mubr.msk.bf16.mxu1 %vm3790_vm0, %v3789_v30 }
 0x617   : > { %3139 = vmatprep.subr.bf16.mxu1 %v3789_v30 }
 0x61d   : > { %3136 = vmatmul.mubr.msk.bf16.vlgmr.msra.gmra.mrb[20].mxu1 %vm1029_vm1, %v1283_v7 }
 0x61e   : > { %3141 = vmatprep.mubr.msk.bf16.mxu1 %vm3790_vm0, %v3789_v30 }
 0x6e8   : > { %v4276_v8 = vpop.f32.mrb[16].mxu1 }
 0x6e9   : > { %v3131_v9 = vpop.f32.mrb[17].mxu1 }
 0x6ea   : > { %v4278_v10 = vpop.f32.mrb[18].mxu1 }
 0x6eb   : > { %v3132_v11 = vpop.f32.mrb[19].mxu1 }
 0x6f0   : > { %v1326_v12 = vpop.f32.mrb[20].mxu1 }
 0x6f1   : > { %v3137_v13 = vpop.f32.mrb[21].mxu1  ;;  %v1333_v14 = vsel %vm1077_vm2, %v1326_v12, -inf }
 0x6f2   : > { %1334 = vmax.xlane.f32.xlu1 %v1333_v14  ;;  %v1329_v15 = vpop.f32.mrb[22].mxu1  ;;  %v1593_v13 = vsel %vm1077_vm2, %v4235_v2, -inf }
 0x6f3   : > { %v3138_v16 = vpop.f32.mrb[23].mxu1  ;;  %v1336_v17 = vsel %vm1077_vm2, %v1329_v15, -inf }
 0x6f4   : > { %1337 = vmax.xlane.f32.xlu0 %v1336_v17 }
 0x703   : > { %1356 = vrot.lane.b32.xlu1 %v4231_v1, %s3792_s19 }
 0x707   : > { %1414 = vrot.lane.b32.xlu1 %v4212_v53, %s3793_s23 }
 0x70b   : > { %1666 = vrot.lane.b32.xlu1 %v4204_v46, %s3791_s15 }
 0x70f   : > { %1663 = vrot.lane.b32.xlu1 %v4208_v51, %s3791_s15 }
 0x713   : > { %1796 = vrot.lane.b32.xlu1 %v4208_v51, %s3792_s19 }
 0x717   : > { %1927 = vrot.lane.b32.xlu1 %v4208_v51, %s3793_s23 }
 0x77f   : > { %v1335_v18 = vpop.xlane.xlu1 %1334 }
 0x780   : > { %v1339_v19 = vsub.f32 %v1326_v12, %v1335_v18 }
 0x781   : > { %v1338_v20 = vpop.xlane.xlu0 %1337 }
 0x782   : > { %v1341_v21 = vmul.f32 1.442695, %v1339_v19  ;;  %v1340_v22 = vsub.f32 %v1329_v15, %v1338_v20  ;;  %v1596_v15 = vsel %vm1077_vm2, %v4237_v6, -inf }
 0x783   : > { %v1357_v23 = vpop.permute.xlu1 %1356 }
 0x784   : > { %3432 = vpow2.f32 %v1341_v21  ;;  %v1343_v53 = vmul.f32 1.442695, %v1340_v22  ;;  %3140 = vmatpush3.bf16.msra.mxu1 %v1357_v23 }
 0x785   : > { %3145 = vmatprep.subr.bf16.mxu1 %v3789_v30 }
 0x786   : > { %3434 = vpow2.f32 %v1343_v53 }
 0x787   : > { %v1415_v24 = vpop.permute.xlu1 %1414 }
 0x78b   : > { %v1667_v25 = vpop.permute.xlu1 %1666 }
 0x78c   : > { %v1672_v26 = vsel %vm1029_vm1, %v1667_v25, 0 }
 0x78d   : > { %3170 = vmatpush3.bf16.xpose.msra.mxu0 %v1672_v26 }
 0x78e   : > { %v3433_v27 = vpop.eup %3432  ;;  %3181 = vmatprep.subr.bf16.mxu0 %v3789_v30 }
 0x78f   : > { %v1345_v51 = vsel %vm1077_vm2, %v3433_v27, 0.0  ;;  %v1664_v29 = vpop.permute.xlu1 %1663 }
 0x790   : > { %v3435_v28 = vpop.eup %3434  ;;  %1346 = vadd.xlane.f32.xlu0 %v1345_v51 }
 0x791   : > { %v1348_v31 = vsel %vm1077_vm2, %v3435_v28, 0.0 }
 0x793   : > { %v1797_v42 = vpop.permute.xlu1 %1796 }
 0x794   : > { %3172 = vmatmul.mubr.msk.bf16.vlgmr.msra.gmra.mrb[12].mxu0 %vm1029_vm1, %v1664_v29  ;;  %1349 = vadd.xlane.f32.xlu0 %v1348_v31 }
 0x795   : > { %3183 = vmatprep.mubr.msk.bf16.mxu0 %vm3790_vm0, %v3789_v30 }
 0x797   : > { %v1928_v44 = vpop.permute.xlu1 %1927 }
 0x7aa   : > { %1416 = vrot.lane.b32.xlu0 %v4206_v49, %s3793_s23 }
 0x7ae   : > { %1798 = vrot.lane.b32.xlu0 %v4204_v46, %s3792_s19 }
 0x7b2   : > { %1929 = vrot.lane.b32.xlu0 %v4204_v46, %s3793_s23 }
 0x81d   : > { %v1347_v32 = vpop.xlane.xlu0 %1346 }
 0x81e   : > { %3436 = vrcp.f32 %v1347_v32 }
 0x821   : > { %v1350_v33 = vpop.xlane.xlu0 %1349 }
 0x822   : > { %3438 = vrcp.f32 %v1350_v33 }
 0x825   : > { %v1417_v34 = vpop.permute.xlu0 %1416 }
 0x826   : > { %v1422_v46 = vsel %vm1029_vm1, %v1417_v34, 0 }
 0x828   : > { %v3437_v36 = vpop.eup %3436 }
 0x829   : > { %v1799_v35 = vpop.permute.xlu0 %1798  ;;  %v1353_v49 = vmul.f32 %v3437_v36, %v3433_v27 }
 0x82a   : > { %v1804_v37 = vsel %vm1029_vm1, %v1799_v35, 0 }
 0x82b   : > { %3182 = vmatpush3.bf16.xpose.msra.mxu0 %v1804_v37 }
 0x82c   : > { %v3439_v38 = vpop.eup %3438  ;;  %3193 = vmatprep.subr.bf16.mxu0 %v3789_v30 }
 0x82d   : > { %v1354_v39 = vmul.f32 %v3439_v38, %v3435_v28  ;;  %v1930_v40 = vpop.permute.xlu0 %1929 }
 0x82e   : > { %v1935_v43 = vsel %vm1029_vm1, %v1930_v40, 0 }
 0x82f   : > { %v1355_v41 = vpack.c.bf16 %v1354_v39, %v1353_v49 }
 0x831   : > { %3142 = vmatmul.mubr.msk.bf16.vlgmr.msra.gmra.mrb[24].mxu1 %vm1077_vm2, %v1355_v41 }
 0x832   : > { %3146 = vmatpush3.bf16.xpose.msra.mxu1 %v1422_v46  ;;  %3184 = vmatmul.mubr.msk.bf16.vlgmr.msra.gmra.mrb[16].mxu0 %vm1029_vm1, %v1797_v42 }
 0x833   : > { %3194 = vmatpush3.bf16.xpose.msra.mxu0 %v1935_v43  ;;  %3147 = vmatprep.mubr.msk.bf16.mxu1 %vm3790_vm0, %v3789_v30 }
 0x834   : > { %3195 = vmatprep.mubr.msk.bf16.mxu0 %vm3790_vm0, %v3789_v30  ;;  %3151 = vmatprep.subr.bf16.mxu1 %v3789_v30 }
 0x839   : > { %3148 = vmatmul.mubr.msk.bf16.vlgmr.msra.gmra.mrb[28].mxu1 %vm1029_vm1, %v1415_v24 }
 0x83a   : > { %3196 = vmatmul.mubr.msk.bf16.vlgmr.msra.gmra.mrb[20].mxu0 %vm1029_vm1, %v1928_v44  ;;  %3153 = vmatprep.mubr.msk.bf16.mxu1 %vm3790_vm0, %v3789_v30 }
 0x867   : > { %v1708_v45 = vpop.f32.mrb[12].mxu0 }
 0x868   : > { %v3173_v47 = vpop.f32.mrb[13].mxu0  ;;  %v1715_v17 = vsel %vm1077_vm2, %v1708_v45, -inf }
 0x869   : > { %v1711_v48 = vpop.f32.mrb[14].mxu0 }
 0x86a   : > { %v3174_v50 = vpop.f32.mrb[15].mxu0  ;;  %v1718_v14 = vsel %vm1077_vm2, %v1711_v48, -inf }
 0x904   : > { %v4323_v52 = vpop.f32.mrb[24].mxu1 }
 0x905   : > { %v3143_v54 = vpop.f32.mrb[25].mxu1  ;;  %v4325_v55 = vpop.f32.mrb[16].mxu0 }
 0x906   : > { %v4327_v56 = vpop.f32.mrb[26].mxu1  ;;  %v3185_v57 = vpop.f32.mrb[17].mxu0  ;;  %v1847_v19 = vsel %vm1077_vm2, %v4325_v55, -inf }
 0x907   : > { %v3144_v58 = vpop.f32.mrb[27].mxu1  ;;  %v1843_v59 = vpop.f32.mrb[18].mxu0 }
 0x908   : > { %v3186_v60 = vpop.f32.mrb[19].mxu0  ;;  %v1850_v16 = vsel %vm1077_vm2, %v1843_v59, -inf }
 0x90c   : > { %v1458_v61 = vpop.f32.mrb[28].mxu1 }
 0x90d   : > { %v3149_v62 = vpop.f32.mrb[29].mxu1  ;;  %v4329_v63 = vpop.f32.mrb[20].mxu0  ;;  %v1465_v3 = vsel %vm1077_vm2, %v1458_v61, -inf }
 0x90e   : > { %v3197_v4 = vpop.f32.mrb[21].mxu0  ;;  %1466 = vmax.xlane.f32.xlu0 %v1465_v3  ;;  %v1461_v5 = vpop.f32.mrb[30].mxu1  ;;  %v1978_v20 = vsel %vm1077_vm2, %v4329_v63, -inf }
 0x90f   : > { %v3150_v7 = vpop.f32.mrb[31].mxu1  ;;  %v4332_v9 = vpop.f32.mrb[22].mxu0  ;;  %v1468_v11 = vsel %vm1077_vm2, %v1461_v5, -inf }
 0x910   : > { %v3198_v12 = vpop.f32.mrb[23].mxu0  ;;  %1469 = vmax.xlane.f32.xlu1 %v1468_v11  ;;  %v1981_v18 = vsel %vm1077_vm2, %v4332_v9, -inf }
 0x912   : > { %1594 = vmax.xlane.f32.xlu0 %v1593_v13 }
 0x914   : > { %1719 = vmax.xlane.f32.xlu1 %v1718_v14 }
 0x916   : > { %1597 = vmax.xlane.f32.xlu0 %v1596_v15 }
 0x918   : > { %1851 = vmax.xlane.f32.xlu1 %v1850_v16 }
 0x91a   : > { %1716 = vmax.xlane.f32.xlu0 %v1715_v17 }
 0x91c   : > { %1982 = vmax.xlane.f32.xlu1 %v1981_v18 }
 0x91e   : > { %1848 = vmax.xlane.f32.xlu0 %v1847_v19 }
 0x922   : > { %1979 = vmax.xlane.f32.xlu0 %v1978_v20 }
 0x99b   : > { %v1467_v21 = vpop.xlane.xlu0 %1466 }
 0x99c   : > { %v1471_v35 = vsub.f32 %v1458_v61, %v1467_v21 }
 0x99d   : > { %v1470_v22 = vpop.xlane.xlu1 %1469 }
 0x99e   : > { %v1472_v36 = vsub.f32 %v1461_v5, %v1470_v22  ;;  %v1473_v39 = vmul.f32 1.442695, %v1471_v35 }
 0x99f   : > { %v1595_v23 = vpop.xlane.xlu0 %1594 }
 0x9a0   : > { %v1599_v53 = vsub.f32 %v4235_v2, %v1595_v23 }
 0x9a1   : > { %v1720_v24 = vpop.xlane.xlu1 %1719 }
 0x9a2   : > { %v1601_v25 = vmul.f32 1.442695, %v1599_v53  ;;  %v1722_v26 = vsub.f32 %v1711_v48, %v1720_v24 }
 0x9a3   : > { %v1598_v27 = vpop.xlane.xlu0 %1597 }
 0x9a4   : > { %3440 = vpow2.f32 %v1601_v25  ;;  %v1600_v51 = vsub.f32 %v4237_v6, %v1598_v27  ;;  %v1725_v29 = vmul.f32 1.442695, %v1722_v26  ;;  %v1475_v6 = vmul.f32 1.442695, %v1472_v36 }
 0x9a5   : > { %v1852_v28 = vpop.xlane.xlu1 %1851 }
 0x9a6   : > { %v1603_v31 = vmul.f32 1.442695, %v1600_v51  ;;  %v1854_v32 = vsub.f32 %v1843_v59, %v1852_v28 }
 0x9a7   : > { %v1717_v33 = vpop.xlane.xlu0 %1716 }
 0x9a8   : > { %3442 = vpow2.f32 %v1603_v31  ;;  %v1721_v34 = vsub.f32 %v1708_v45, %v1717_v33  ;;  %v1857_v37 = vmul.f32 1.442695, %v1854_v32 }
 0x9a9   : > { %3444 = vpow2.f32 %v1725_v29  ;;  %v1983_v42 = vpop.xlane.xlu1 %1982 }
 0x9aa   : > { %v1723_v38 = vmul.f32 1.442695, %v1721_v34  ;;  %v1985_v47 = vsub.f32 %v4332_v9, %v1983_v42 }
 0x9ab   : > { %v1849_v2 = vpop.xlane.xlu0 %1848 }
 0x9ac   : > { %3446 = vpow2.f32 %v1723_v38  ;;  %v1853_v49 = vsub.f32 %v4325_v55, %v1849_v2  ;;  %v1988_v57 = vmul.f32 1.442695, %v1985_v47  ;;  %v3368_v47 = vld [vmem:[#allocation11] sm:$0xff]  }
 0x9ad   : > { %3448 = vpow2.f32 %v1857_v37  ;;  %3205 = vmatprep.subr.bf16.mxu0 %v3368_v47 }
 0x9ae   : > { %v4351_v40 = vpop.eup %3440  ;;  %v1855_v41 = vmul.f32 1.442695, %v1853_v49  ;;  %3206 = vmatpush3.bf16.msra.mxu0 %v3368_v47 }
 0x9af   : > { %v1980_v46 = vpop.xlane.xlu0 %1979  ;;  %v1605_v43 = vsel %vm1077_vm2, %v4351_v40, 0.0 }
 0x9b0   : > { %3450 = vpow2.f32 %v1855_v41  ;;  %v1984_v44 = vsub.f32 %v4329_v63, %v1980_v46  ;;  %1606 = vadd.xlane.f32.xlu0 %v1605_v43 }
 0x9b1   : > { %3452 = vpow2.f32 %v1473_v39 }
 0x9b2   : > { %v4356_v45 = vpop.eup %3442  ;;  %3454 = vpow2.f32 %v1475_v6  ;;  %v1986_v48 = vmul.f32 1.442695, %v1984_v44 }
 0x9b3   : > { %v1608_v50 = vsel %vm1077_vm2, %v4356_v45, 0.0  ;;  %v4361_v54 = vpop.eup %3444 }
 0x9b4   : > { %1609 = vadd.xlane.f32.xlu1 %v1608_v50  ;;  %3456 = vpow2.f32 %v1986_v48  ;;  %v1730_v59 = vsel %vm1077_vm2, %v4361_v54, 0.0 }
 0x9b5   : > { %3458 = vpow2.f32 %v1988_v57  ;;  %v3369_v57 = vld [vmem:[#allocation11 + $0x8] sm:$0xff]  }
 0x9b6   : > { %v4363_v55 = vpop.eup %3446  ;;  %3207 = vmatprep.subr.bf16.mxu0 %v3369_v57 }
 0x9b7   : > { %v1727_v58 = vsel %vm1077_vm2, %v4363_v55, 0.0  ;;  %v4369_v60 = vpop.eup %3448  ;;  %3208 = vmatpush3.bf16.msra.mxu0 %v3369_v57 }
 0x9b8   : > { %1728 = vadd.xlane.f32.xlu0 %v1727_v58  ;;  %1731 = vadd.xlane.f32.xlu1 %v1730_v59  ;;  %v1862_v3 = vsel %vm1077_vm2, %v4369_v60, 0.0 }
 0x9ba   : > { %v4371_v61 = vpop.eup %3450 }
 0x9bb   : > { %v3453_v62 = vpop.eup %3452  ;;  %v1859_v63 = vsel %vm1077_vm2, %v4371_v61, 0.0 }
 0x9bc   : > { %v3455_v4 = vpop.eup %3454  ;;  %1860 = vadd.xlane.f32.xlu0 %v1859_v63  ;;  %1863 = vadd.xlane.f32.xlu1 %v1862_v3  ;;  %v1477_v5 = vsel %vm1077_vm2, %v3453_v62, 0.0  ;;  %v3372_v63 = vld [vmem:[#allocation11 + $0x20] sm:$0xff]  }
 0x9bd   : > { %v1480_v7 = vsel %vm1077_vm2, %v3455_v4, 0.0 }
 0x9be   : > { %v4379_v9 = vpop.eup %3456 }
 0x9bf   : > { %v1990_v11 = vsel %vm1077_vm2, %v4379_v9, 0.0  ;;  %v4383_v12 = vpop.eup %3458 }
 0x9c0   : > { %1478 = vadd.xlane.f32.xlu0 %v1477_v5  ;;  %1481 = vadd.xlane.f32.xlu1 %v1480_v7  ;;  %v1993_v13 = vsel %vm1077_vm2, %v4383_v12, 0.0 }
 0x9c4   : > { %1991 = vadd.xlane.f32.xlu1 %v1990_v11  ;;  %v3374_v11 = vld [vmem:[#allocation11 + $0x30] sm:$0xff]  }
 0x9c8   : > { %1994 = vadd.xlane.f32.xlu1 %v1993_v13 }
 0x9d6   : > { %1488 = vrot.lane.b32.xlu0 %v4231_v1, %s3793_s23 }
 0x9d9   : > { %1739 = vrot.lane.b32.xlu1 %v4229_v0, %s3791_s15 }
 0x9da   : > { %1870 = vrot.lane.b32.xlu0 %v4229_v0, %s3792_s19 }
 0x9dd   : > { %2001 = vrot.lane.b32.xlu1 %v4229_v0, %s3793_s23 }
 0x9de   : > { %1273 = vrot.lane.b32.xlu0 %v4276_v8, %s3793_s23 }
 0x9e1   : > { %1275 = vrot.lane.b32.xlu1 %v4278_v10, %s3793_s23 }
 0x9e2   : > { %1405 = vrot.lane.b32.xlu0 %v4323_v52, %s3792_s19 }
 0x9e5   : > { %1407 = vrot.lane.b32.xlu1 %v4327_v56, %s3792_s19 }
 0xa3d   : > { %v1607_v1 = vpop.xlane.xlu0 %1606 }
 0xa41   : > { %v1610_v14 = vpop.xlane.xlu1 %1609 }
 0xa45   : > { %v1729_v15 = vpop.xlane.xlu0 %1728  ;;  %v1732_v16 = vpop.xlane.xlu1 %1731 }
 0xa49   : > { %v1861_v17 = vpop.xlane.xlu0 %1860  ;;  %v1864_v18 = vpop.xlane.xlu1 %1863 }
 0xa4d   : > { %v1479_v19 = vpop.xlane.xlu0 %1478  ;;  %v1482_v20 = vpop.xlane.xlu1 %1481 }
 0xa4e   : > { %3460 = vrcp.f32 %v1479_v19 }
 0xa4f   : > { %3462 = vrcp.f32 %v1482_v20 }
 0xa50   : > { %3464 = vrcp.f32 %v1610_v14 }
 0xa51   : > { %v1489_v8 = vpop.permute.xlu0 %1488  ;;  %v1992_v21 = vpop.xlane.xlu1 %1991  ;;  %3466 = vrcp.f32 %v1607_v1 }
 0xa52   : > { %3152 = vmatpush3.bf16.msra.mxu1 %v1489_v8  ;;  %3468 = vrcp.f32 %v1729_v15 }
 0xa53   : > { %3163 = vmatprep.subr.bf16.mxu1 %v3789_v30  ;;  %3470 = vrcp.f32 %v1732_v16 }
 0xa54   : > { %3472 = vrcp.f32 %v1861_v17 }
 0xa55   : > { %v1871_v10 = vpop.permute.xlu0 %1870  ;;  %v1995_v52 = vpop.xlane.xlu1 %1994  ;;  %3474 = vrcp.f32 %v1864_v18 }
 0xa56   : > { %3476 = vrcp.f32 %v1995_v52 }
 0xa57   : > { %3478 = vrcp.f32 %v1992_v21 }
 0xa58   : > { %v3461_v56 = vpop.eup %3460 }
 0xa59   : > { %v3463_v22 = vpop.eup %3462  ;;  %v1485_v23 = vmul.f32 %v3461_v56, %v3453_v62  ;;  %v1274_v53 = vpop.permute.xlu0 %1273  ;;  %v3371_v62 = vld [vmem:[#allocation11 + $0x18] sm:$0xff]  }
 0xa5a   : > { %v1740_v24 = vpop.permute.xlu1 %1739  ;;  %v1486_v25 = vmul.f32 %v3463_v22, %v3455_v4  ;;  %1280 = vst.msk [vmem:[#allocation2] sm:$0xff] %vm1279_vm3, %v1274_v53  ;;  %v3465_v27 = vpop.eup %3464 }
 0xa5b   : > { %v3467_v29 = vpop.eup %3466  ;;  %v1614_v31 = vmul.f32 %v3465_v27, %v4356_v45 }
 0xa5c   : > { %v1487_v26 = vpack.c.bf16 %v1486_v25, %v1485_v23  ;;  %v1613_v33 = vmul.f32 %v3467_v29, %v4351_v40  ;;  %v3469_v34 = vpop.eup %3468 }
 0xa5d   : > { %v1406_v51 = vpop.permute.xlu0 %1405  ;;  %v3471_v36 = vpop.eup %3470 }
 0xa5e   : > { %v2002_v28 = vpop.permute.xlu1 %2001  ;;  %1412 = vst.msk [vmem:[#allocation2] sm:$0xff] %vm1411_vm4, %v1406_v51  ;;  %3154 = vmatmul.mubr.msk.bf16.vlgmr.msra.gmra.mrb[32].mxu1 %vm1077_vm2, %v1487_v26  ;;  %v1615_v35 = vpack.c.bf16 %v1614_v31, %v1613_v33  ;;  %v1736_v38 = vmul.f32 %v3471_v36, %v4361_v54  ;;  %v3473_v2 = vpop.eup %3472 }
 0xa5f   : > { %3164 = vmatpush3.bf16.msra.mxu1 %v4229_v0  ;;  %3165 = vmatprep.mubr.msk.bf16.mxu1 %vm3790_vm0, %v3789_v30  ;;  %v1735_v0 = vmul.f32 %v3469_v34, %v4363_v55  ;;  %v3475_v39 = vpop.eup %3474  ;;  %v1867_v40 = vmul.f32 %v3473_v2, %v4371_v61 }
 0xa60   : > { %3175 = vmatprep.subr.bf16.mxu1 %v3789_v30  ;;  %v1868_v6 = vmul.f32 %v3475_v39, %v4369_v60  ;;  %v3477_v42 = vpop.eup %3476  ;;  %v3498_v39 = vld [vmem:[%s4170_s13 + $0x10] sm:$0xff] }
 0xa61   : > { %v1737_v49 = vpack.c.bf16 %v1736_v38, %v1735_v0  ;;  %v3479_v46 = vpop.eup %3478  ;;  %v1999_v43 = vmul.f32 %v3477_v42, %v4383_v12  ;;  %v3375_v12 = vld [vmem:[#allocation11 + $0x38] sm:$0xff]   ;;  %v3497_v38 = vld [vmem:[%s4170_s13 + $0x8] sm:$0xff] }
 0xa62   : > { %v1276_v32 = vpop.permute.xlu1 %1275  ;;  %v1869_v41 = vpack.c.bf16 %v1868_v6, %v1867_v40  ;;  %v1998_v44 = vmul.f32 %v3479_v46, %v4379_v9  ;;  %v3373_v9 = vld [vmem:[#allocation11 + $0x28] sm:$0xff]   ;;  %v3499_v6 = vld [vmem:[%s4170_s13 + $0x18] sm:$0xff] }
 0xa63   : > { %1281 = vst.msk [vmem:[#allocation2 + $0x8] sm:$0xff] %vm1279_vm3, %v1276_v32  ;;  %v3376_v42 = vld [vmem:[#allocation12] ss:$8 sps:$4 sm:$0xff]   ;;  %v3378_v46 = vld [vmem:[#allocation12 + $0x4] ss:$8 sps:$4 sm:$0xff]  }
 0xa64   : > { %v2000_v45 = vpack.c.bf16 %v1999_v43, %v1998_v44  ;;  %v3381_v43 = vld [vmem:[#allocation12 + $0x14] ss:$8 sps:$4 sm:$0xff]   ;;  %v3379_v44 = vld [vmem:[#allocation12 + $0x10] ss:$8 sps:$4 sm:$0xff]  }
 0xa66   : > { %v1408_v37 = vpop.permute.xlu1 %1407  ;;  %3166 = vmatmul.mubr.msk.bf16.vlgmr.msra.gmra.mrb[36].mxu1 %vm1077_vm2, %v1615_v35 }
 0xa67   : > { %1413 = vst.msk [vmem:[#allocation2 + $0x8] sm:$0xff] %vm1411_vm4, %v1408_v37  ;;  %3176 = vmatpush3.bf16.msra.mxu1 %v1740_v24  ;;  %3177 = vmatprep.mubr.msk.bf16.mxu1 %vm3790_vm0, %v3789_v30  ;;  %v3496_v37 = vld [vmem:[%s4170_s13] sm:$0xff] }
 0xa68   : > { %3187 = vmatprep.subr.bf16.mxu1 %v3789_v30 }
 0xa6e   : > { %3178 = vmatmul.mubr.msk.bf16.vlgmr.msra.gmra.mrb[40].mxu1 %vm1077_vm2, %v1737_v49 }
 0xa6f   : > { %3188 = vmatpush3.bf16.msra.mxu1 %v1871_v10  ;;  %3189 = vmatprep.mubr.msk.bf16.mxu1 %vm3790_vm0, %v3789_v30 }
 0xa70   : > { %3199 = vmatprep.subr.bf16.mxu1 %v3789_v30 }
 0xa76   : > { %3190 = vmatmul.mubr.msk.bf16.vlgmr.msra.gmra.mrb[44].mxu1 %vm1077_vm2, %v1869_v41 }
 0xa77   : > { %3200 = vmatpush3.bf16.msra.mxu1 %v2002_v28  ;;  %3201 = vmatprep.mubr.msk.bf16.mxu1 %vm3790_vm0, %v3789_v30  ;;  %v3370_v30 = vld [vmem:[#allocation11 + $0x10] sm:$0xff]   ;;  %v2896_v28 = vld [vmem:[%s4627_s30] ss:$0 sm:$0xff]  ;;  %s4631_s30 = sld [smem:[#allocation26_spill]] }
 0xa78   : > { %3209 = vmatprep.subr.bf16.mxu0 %v3370_v30  ;;  %2365 = vmatprep.subr.bf16.mxu1 %v3378_v46 }
 0xa79   : > { %3210 = vmatpush3.bf16.msra.mxu0 %v3370_v30 }
 0xa7a   : > { %3211 = vmatprep.subr.bf16.mxu0 %v3371_v62 }
 0xa7d   : > { %3212 = vmatpush3.bf16.msra.mxu0 %v3371_v62 }
 0xa7e   : > { %3202 = vmatmul.mubr.msk.bf16.vlgmr.msra.gmra.mrb[48].mxu1 %vm1077_vm2, %v2000_v45  ;;  %3213 = vmatprep.subr.bf16.mxu0 %v3372_v63 }
 0xa7f   : > { %2366 = vmatpush1.bf16.msra.mxu1 %v3376_v42 }
 0xa80   : > { %2367 = vmatprep.subr.bf16.mxu1 %v3381_v43 }
 0xa81   : > { %3214 = vmatpush3.bf16.msra.mxu0 %v3372_v63 }
 0xa82   : > { %3215 = vmatprep.subr.bf16.mxu0 %v3373_v9 }
 0xa83   : > { %2368 = vmatpush1.bf16.msra.mxu1 %v3379_v44 }
 0xa85   : > { %3216 = vmatpush3.bf16.msra.mxu0 %v3373_v9  ;;  %v3387_v9 = vld [vmem:[#allocation12 + $0x34] ss:$8 sps:$4 sm:$0xff]  }
 0xa86   : > { %3217 = vmatprep.subr.bf16.mxu0 %v3374_v11 }
 0xa89   : > { %3218 = vmatpush3.bf16.msra.mxu0 %v3374_v11  ;;  %v3385_v11 = vld [vmem:[#allocation12 + $0x30] ss:$8 sps:$4 sm:$0xff]  }
 0xa8a   : > { %3219 = vmatprep.subr.bf16.mxu0 %v3375_v12 }
 0xa8d   : > { %3220 = vmatpush3.bf16.msra.mxu0 %v3375_v12  ;;  %v3390_v12 = vld [vmem:[#allocation12 + $0x44] ss:$8 sps:$4 sm:$0xff]  }
 0xb31   : > { %v1528_v48 = vpop.f32.mrb[32].mxu1 }
 0xb32   : > { %1537 = vrot.lane.b32.xlu0 %v1528_v48, %s3791_s15  ;;  %v3155_v50 = vpop.f32.mrb[33].mxu1 }
 0xb33   : > { %v1531_v54 = vpop.f32.mrb[34].mxu1 }
 0xb34   : > { %1539 = vrot.lane.b32.xlu1 %v1531_v54, %s3791_s15  ;;  %v3156_v55 = vpop.f32.mrb[35].mxu1 }
 0xb39   : > { %v1653_v58 = vpop.f32.mrb[36].mxu1 }
 0xb3a   : > { %1660 = vst.msk [vmem:[#allocation2 + $0x10] sm:$0xff] %vm1029_vm1, %v1653_v58  ;;  %v3167_v59 = vpop.f32.mrb[37].mxu1 }
 0xb3b   : > { %v1656_v60 = vpop.f32.mrb[38].mxu1 }
 0xb3c   : > { %1661 = vst.msk [vmem:[#allocation2 + $0x18] sm:$0xff] %vm1029_vm1, %v1656_v60  ;;  %v3168_v61 = vpop.f32.mrb[39].mxu1 }
 0xb41   : > { %v1779_v3 = vpop.f32.mrb[40].mxu1 }
 0xb42   : > { %1788 = vrot.lane.b32.xlu0 %v1779_v3, %s3793_s23  ;;  %v3179_v4 = vpop.f32.mrb[41].mxu1 }
 0xb43   : > { %v1782_v5 = vpop.f32.mrb[42].mxu1 }
 0xb44   : > { %1790 = vrot.lane.b32.xlu1 %v1782_v5, %s3793_s23  ;;  %v3180_v7 = vpop.f32.mrb[43].mxu1  ;;  %v3384_v5 = vld [vmem:[#allocation12 + $0x24] ss:$8 sps:$4 sm:$0xff]   ;;  %s4630_s23 = sld [smem:[#allocation25_spill]] }
 0xb45   : > { %v3382_v7 = vld [vmem:[#allocation12 + $0x20] ss:$8 sps:$4 sm:$0xff]   ;;  %2369 = vmatprep.subr.bf16.mxu1 %v3384_v5 }
 0xb46   : > { %2370 = vmatpush1.bf16.msra.mxu1 %v3382_v7 }
 0xb47   : > { %2371 = vmatprep.subr.bf16.mxu1 %v3387_v9 }
 0xb49   : > { %v1910_v13 = vpop.f32.mrb[44].mxu1 }
 0xb4a   : > { %1919 = vrot.lane.b32.xlu0 %v1910_v13, %s3792_s19  ;;  %v3191_v1 = vpop.f32.mrb[45].mxu1  ;;  %2372 = vmatpush1.bf16.msra.mxu1 %v3385_v11  ;;  %v3388_v13 = vld [vmem:[#allocation12 + $0x40] ss:$8 sps:$4 sm:$0xff]  }
 0xb4b   : > { %v1913_v14 = vpop.f32.mrb[46].mxu1  ;;  %2373 = vmatprep.subr.bf16.mxu1 %v3390_v12  ;;  %v3393_v1 = vld [vmem:[#allocation12 + $0x54] ss:$8 sps:$4 sm:$0xff]   ;;  %v2273_v5 = vld [vmem:[%s4630_s23] sm:$0x3] }
 0xb4c   : > { %1921 = vrot.lane.b32.xlu1 %v1913_v14, %s3792_s19  ;;  %v3192_v15 = vpop.f32.mrb[47].mxu1  ;;  %v3391_v14 = vld [vmem:[#allocation12 + $0x50] ss:$8 sps:$4 sm:$0xff]   ;;  %s2948_s19 = sshll.u32 %s3909_s0, 9  ;;  %s3795_s0 = smov [#allocation15]  }
 0xb4d   : > { %v3396_v15 = vld [vmem:[#allocation12 + $0x64] ss:$8 sps:$4 sm:$0xff]  }
 0xb4e   : > { %2374 = vmatpush1.bf16.msra.mxu1 %v3388_v13 }
 0xb4f   : > { %2375 = vmatprep.subr.bf16.mxu1 %v3393_v1 }
 0xb51   : > { %v2041_v16 = vpop.f32.mrb[48].mxu1 }
 0xb52   : > { %2050 = vrot.lane.b32.xlu0 %v2041_v16, %s3791_s15  ;;  %v3203_v17 = vpop.f32.mrb[49].mxu1  ;;  %2376 = vmatpush1.bf16.msra.mxu1 %v3391_v14  ;;  %v3394_v16 = vld [vmem:[#allocation12 + $0x60] ss:$8 sps:$4 sm:$0xff]  }
 0xb53   : > { %v2044_v18 = vpop.f32.mrb[50].mxu1  ;;  %v3399_v17 = vld [vmem:[#allocation12 + $0x74] ss:$8 sps:$4 sm:$0xff]   ;;  %2377 = vmatprep.subr.bf16.mxu1 %v3396_v15 }
 0xb54   : > { %2052 = vrot.lane.b32.xlu1 %v2044_v18, %s3791_s15  ;;  %v3204_v19 = vpop.f32.mrb[51].mxu1  ;;  %v3397_v18 = vld [vmem:[#allocation12 + $0x70] ss:$8 sps:$4 sm:$0xff]   ;;  %s653_s15 = scalar_lea.vmem [#allocation15], %s2845_s1  ;;  %s2689_s1 = scalar_lea.sflag [#allocation5], %s4164_s22 }
 0xb55   : > { %v3794_v19 = vmov 0   ;;  %s2702_s23 = sshll.u32 %s653_s15, 4  ;;  %s4520_s23 = int_to_ptr.vmem [resolvable:$true] %s2702_s23 }
 0xb56   : > { %2378 = vmatpush1.bf16.msra.mxu1 %v3394_v16  ;;  %2397 = vmatprep.mubr.bf16.mxu1 %v3794_v19  ;;  %s3698_s29 = scalar_lea.vmem %s4520_s23, 512 }
 0xb57   : > { %2379 = vmatprep.subr.bf16.mxu1 %v3399_v17  ;;  %p3699_p6 = scmp.ne.s32.totalorder %s4520_s23, %s3698_s29 }
 0xb59   : > { %p3700_p12 = pnand %p3699_p6, %p4635_p9 }
 0xb5a   : > { %2380 = vmatpush1.bf16.msra.mxu1 %v3397_v18 }
 0xb5b   : > { %p3701_p1 = pneg %p3700_p12 }
 0xba4   : > { %v1538_v20 = vpop.permute.xlu0 %1537 }
 0xba5   : > { %1544 = vst.msk [vmem:[#allocation2] sm:$0xff] %vm1543_vm5, %v1538_v20  ;;  %v3400_v20 = vld [vmem:[#allocation14 + $0x40] sm:$0xff]  }
 0xba6   : > { %v1540_v8 = vpop.permute.xlu1 %1539  ;;  %3021 = vmatprep.subr.bf16.mxu0 %v3400_v20 }
 0xba7   : > { %1545 = vst.msk [vmem:[#allocation2 + $0x8] sm:$0xff] %vm1543_vm5, %v1540_v8  ;;  %v3401_v8 = vld [vmem:[#allocation14] sm:$0xff]  }
 0xbac   : > { %v2058_v21 = vld [vmem:[#allocation2] sm:$0xff] }
 0xbae   : > { %v2059_v10 = vld [vmem:[#allocation2 + $0x8] sm:$0xff] }
 0xbaf   : > { %v2062_v52 = vpack.c.bf16 %v2059_v10, %v2058_v21  ;;  %v3402_v21 = vld [vmem:[#allocation14 + $0x48] sm:$0xff]  }
 0xbb0   : > { %v3403_v10 = vld [vmem:[#allocation14 + $0x8] sm:$0xff]  }
 0xbb1   : > { %3221 = vmatprep.mubr.bf16.mxu0 %v2062_v52  ;;  %v3404_v52 = vld [vmem:[#allocation14 + $0x50] sm:$0xff]  }
 0xbb4   : > { %v1789_v56 = vpop.permute.xlu0 %1788 }
 0xbb5   : > { %1794 = vst.msk [vmem:[#allocation2 + $0x10] sm:$0xff] %vm1279_vm3, %v1789_v56  ;;  %v3405_v56 = vld [vmem:[#allocation14 + $0x10] sm:$0xff]  }
 0xbb6   : > { %v1791_v22 = vpop.permute.xlu1 %1790 }
 0xbb7   : > { %1795 = vst.msk [vmem:[#allocation2 + $0x18] sm:$0xff] %vm1279_vm3, %v1791_v22  ;;  %v3406_v22 = vld [vmem:[#allocation14 + $0x58] sm:$0xff]  }
 0xbbc   : > { %v1920_v23 = vpop.permute.xlu0 %1919 }
 0xbbd   : > { %1925 = vst.msk [vmem:[#allocation2 + $0x10] sm:$0xff] %vm1411_vm4, %v1920_v23  ;;  %v3407_v23 = vld [vmem:[#allocation14 + $0x18] sm:$0xff]  }
 0xbbe   : > { %v1922_v53 = vpop.permute.xlu1 %1921 }
 0xbbf   : > { %1926 = vst.msk [vmem:[#allocation2 + $0x18] sm:$0xff] %vm1411_vm4, %v1922_v53  ;;  %v3408_v53 = vld [vmem:[#allocation14 + $0x60] sm:$0xff]  }
 0xbc4   : > { %v2051_v24 = vpop.permute.xlu0 %2050 }
 0xbc5   : > { %2056 = vst.msk [vmem:[#allocation2 + $0x10] sm:$0xff] %vm1543_vm5, %v2051_v24  ;;  %v3409_v24 = vld [vmem:[#allocation14 + $0x20] sm:$0xff]  }
 0xbc6   : > { %v2053_v25 = vpop.permute.xlu1 %2052 }
 0xbc7   : > { %2057 = vst.msk [vmem:[#allocation2 + $0x18] sm:$0xff] %vm1543_vm5, %v2053_v25  ;;  %v3410_v25 = vld [vmem:[#allocation14 + $0x68] sm:$0xff]  }
 0xbcc   : > { %v2060_v26 = vld [vmem:[#allocation2 + $0x10] sm:$0xff] }
 0xbce   : > { %v2061_v27 = vld [vmem:[#allocation2 + $0x18] sm:$0xff] }
 0xbcf   : > { %v2063_v51 = vpack.c.bf16 %v2061_v27, %v2060_v26 }
 0xbd1   : > { %3222 = vmatmul.mubr.bf16.vlgmr.msra.gmra.mrb[24].mxu0 %v2063_v51 }
 0xbd2   : > { %3022 = vmatpush3.bf16.msra.mxu0 %v3401_v8 }
 0xbd3   : > { %3023 = vmatprep.subr.bf16.mxu0 %v3402_v21 }
 0xbd6   : > { %3024 = vmatpush3.bf16.msra.mxu0 %v3403_v10 }
 0xbd7   : > { %3025 = vmatprep.subr.bf16.mxu0 %v3404_v52 }
 0xbda   : > { %3026 = vmatpush3.bf16.msra.mxu0 %v3405_v56 }
 0xbdb   : > { %3027 = vmatprep.subr.bf16.mxu0 %v3406_v22 }
 0xbde   : > { %3028 = vmatpush3.bf16.msra.mxu0 %v3407_v23 }
 0xbdf   : > { %3029 = vmatprep.subr.bf16.mxu0 %v3408_v53 }
 0xbe2   : > { %3030 = vmatpush3.bf16.msra.mxu0 %v3409_v24 }
 0xbe3   : > { %3031 = vmatprep.subr.bf16.mxu0 %v3410_v25 }
 0xca4   : > { %v3223_v29 = vpop.f32.mrb[24].mxu0 }
 0xca5   : > { %v2169_v31 = vpop.f32.mrb[25].mxu0  ;;  %v2178_v35 = vadd.f32 %v3223_v29, %v2896_v28 }
 0xca6   : > { %v2170_v32 = vadd.f32 %v2896_v28, %v2169_v31  ;;  %v3224_v33 = vpop.f32.mrb[26].mxu0 }
 0xca7   : > { %v2172_v34 = vpop.f32.mrb[27].mxu0  ;;  %v2181_v49 = vadd.f32 %v3224_v33, %v2896_v28  ;;  %v2186_v40 = vadd.f32 %v3498_v39, %v2178_v35 }
 0xca8   : > { %v2173_v36 = vadd.f32 %v2896_v28, %v2172_v34  ;;  %v2184_v0 = vadd.f32 %v3496_v37, %v2170_v32 }
 0xca9   : > { %v2187_v41 = vadd.f32 %v3499_v6, %v2181_v49 }
 0xcaa   : > { %2190 = vadd.xlane.f32.xlu0 %v2184_v0  ;;  %v2185_v2 = vadd.f32 %v3497_v38, %v2173_v36  ;;  %v2905_v38 = vld [vmem:[%s4628_s8] ss:$0 sm:$0xff]  ;;  %s4632_s8 = sld [smem:[#allocation29_spill]] }
 0xcac   : > { %2192 = vadd.xlane.f32.xlu1 %v2185_v2 }
 0xcae   : > { %2194 = vadd.xlane.f32.xlu0 %v2186_v40 }
 0xcb2   : > { %2196 = vadd.xlane.f32.xlu0 %v2187_v41 }
 0xd37   : > { %v2191_v45 = vpop.xlane.xlu0 %2190 }
 0xd38   : > { %v2199_v47 = vmul.f32 0.0078125, %v2191_v45 }
 0xd39   : > { %v2193_v48 = vpop.xlane.xlu1 %2192 }
 0xd3a   : > { %v4458_v50 = vsub.f32 %v2184_v0, %v2199_v47  ;;  %v2200_v54 = vmul.f32 0.0078125, %v2193_v48 }
 0xd3b   : > { %v2195_v55 = vpop.xlane.xlu0 %2194 }
 0xd3c   : > { %v4460_v57 = vsub.f32 %v2185_v2, %v2200_v54  ;;  %v2201_v30 = vmul.f32 0.0078125, %v2195_v55  ;;  %v2207_v58 = vmul.f32 %v4458_v50, %v4458_v50 }
 0xd3e   : > { %v4464_v59 = vsub.f32 %v2186_v40, %v2201_v30  ;;  %2211 = vadd.xlane.f32.xlu0 %v2207_v58  ;;  %v2208_v60 = vmul.f32 %v4460_v57, %v4460_v57  ;;  %v3411_v58 = vld [vmem:[#allocation14 + $0x28] sm:$0xff]  }
 0xd3f   : > { %v2197_v61 = vpop.xlane.xlu0 %2196  ;;  %3032 = vmatpush3.bf16.msra.mxu0 %v3411_v58 }
 0xd40   : > { %v2202_v62 = vmul.f32 0.0078125, %v2197_v61  ;;  %2213 = vadd.xlane.f32.xlu1 %v2208_v60  ;;  %v2209_v63 = vmul.f32 %v4464_v59, %v4464_v59  ;;  %v3413_v60 = vld [vmem:[#allocation14 + $0x30] sm:$0xff]   ;;  %v3414_v61 = vld [vmem:[#allocation14 + $0x78] sm:$0xff]  }
 0xd42   : > { %v4470_v3 = vsub.f32 %v2187_v41, %v2202_v62  ;;  %2215 = vadd.xlane.f32.xlu0 %v2209_v63  ;;  %v2906_v41 = vld [vmem:[%s4629_s28] ss:$0 sm:$0xff]  ;;  %v3415_v62 = vld [vmem:[#allocation14 + $0x38] sm:$0xff]   ;;  %v2275_v63 = vlaneseq  ;;  %s4633_s28 = sld [smem:[#allocation30_spill]] }
 0xd44   : > { %v2210_v4 = vmul.f32 %v4470_v3, %v4470_v3 }
 0xd46   : > { %2217 = vadd.xlane.f32.xlu1 %v2210_v4 }
 0xdcb   : > { %v2212_v26 = vpop.xlane.xlu0 %2211 }
 0xdcc   : > { %v2219_v27 = vmul.f32 0.0078125, %v2212_v26 }
 0xdcd   : > { %v2214_v51 = vpop.xlane.xlu1 %2213 }
 0xdce   : > { %v2223_v28 = vadd.f32 1e-05, %v2219_v27  ;;  %v2220_v29 = vmul.f32 0.0078125, %v2214_v51 }
 0xdcf   : > { %v2216_v31 = vpop.xlane.xlu0 %2215 }
 0xdd0   : > { %3480 = vrsqrt.f32 %v2223_v28  ;;  %v2224_v32 = vadd.f32 1e-05, %v2220_v29  ;;  %v2221_v33 = vmul.f32 0.0078125, %v2216_v31 }
 0xdd2   : > { %3482 = vrsqrt.f32 %v2224_v32  ;;  %v2225_v34 = vadd.f32 1e-05, %v2221_v33 }
 0xdd3   : > { %v2218_v35 = vpop.xlane.xlu1 %2217 }
 0xdd4   : > { %3484 = vrsqrt.f32 %v2225_v34  ;;  %v2222_v36 = vmul.f32 0.0078125, %v2218_v35  ;;  %v2923_v35 = vld [vmem:[%s4631_s30] ss:$0 sm:$0xff]  ;;  %s4634_s30 = sld [smem:[#allocation31_spill]] }
 0xdd6   : > { %v2226_v37 = vadd.f32 1e-05, %v2222_v36 }
 0xdd8   : > { %3486 = vrsqrt.f32 %v2226_v37 }
 0xdda   : > { %v3481_v0 = vpop.eup %3480  ;;  %s4518_s13 = scalar_lea.hbm %s4634_s30, %s2948_s19 }
 0xddb   : > { %v2231_v2 = vmul.f32 %v3481_v0, %v4458_v50 }
 0xddc   : > { %v3483_v49 = vpop.eup %3482 }
 0xddd   : > { %v2232_v39 = vmul.f32 %v3483_v49, %v4460_v57  ;;  %v2241_v40 = vmul.f32 %v2905_v38, %v2231_v2 }
 0xdde   : > { %v3485_v6 = vpop.eup %3484 }
 0xddf   : > { %v2242_v42 = vmul.f32 %v2905_v38, %v2232_v39  ;;  %v4482_v46 = vadd.f32 %v2906_v41, %v2241_v40  ;;  %v2233_v44 = vmul.f32 %v3485_v6, %v4464_v59  ;;  %v3412_v59 = vld [vmem:[#allocation14 + $0x70] sm:$0xff]  }
 0xde0   : > { %3033 = vmatprep.subr.bf16.mxu0 %v3412_v59 }
 0xde1   : > { %v4484_v43 = vadd.f32 %v2906_v41, %v2242_v42  ;;  %v2243_v50 = vmul.f32 %v2905_v38, %v2233_v44  ;;  %3034 = vmatpush3.bf16.msra.mxu0 %v3413_v60 }
 0xde2   : > { %v3487_v45 = vpop.eup %3486  ;;  %3035 = vmatprep.subr.bf16.mxu0 %v3414_v61 }
 0xde3   : > { %v2255_v47 = vpack.c.bf16 %v4484_v43, %v4482_v46  ;;  %v2234_v48 = vmul.f32 %v3487_v45, %v4470_v3  ;;  %v4492_v57 = vadd.f32 %v2906_v41, %v2243_v50  ;;  %v2276_v3 = vshrl.u32 %v2275_v63, 7 }
 0xde5   : > { %2398 = vmatmul.mubr.bf16.vlgmr.msra.gmra.mrb[52].mxu1 %v2255_v47  ;;  %v2244_v54 = vmul.f32 %v2905_v38, %v2234_v48  ;;  %3036 = vmatpush3.bf16.msra.mxu0 %v3415_v62  ;;  %v2277_v4 = vsub.s32 0, %v2276_v3  ;;  %v2281_v7 = vsub.s32 1, %v2276_v3 }
 0xde6   : > { %2407 = vmatprep.mubr.bf16.mxu1 %v3794_v19 }
 0xde7   : > { %v4490_v55 = vadd.f32 %v2906_v41, %v2244_v54  ;;  %v2278_v9 = vrot.slane %v2273_v5, %v2277_v4  ;;  %v2282_v11 = vrot.slane %v2273_v5, %v2281_v7 }
 0xde9   : > { %v2256_v30 = vpack.c.bf16 %v4490_v55, %v4492_v57 }
 0xded   : > { %2408 = vmatmul.mubr.bf16.gmra.mrb[56].mxu1 %v2256_v30 }
 0xeb8   : > { %v2399_v12 = vpop.f32.mrb[52].mxu1 }
 0xeb9   : > { %v2400_v13 = vadd.f32 %v2399_v12, %v2278_v9  ;;  %v2401_v1 = vpop.f32.mrb[53].mxu1 }
 0xeba   : > { %v2402_v14 = vadd.f32 %v2401_v1, %v2282_v11  ;;  %v2403_v15 = vpop.f32.mrb[54].mxu1 }
 0xebb   : > { %v2404_v16 = vadd.f32 %v2403_v15, %v2278_v9  ;;  %v2405_v17 = vpop.f32.mrb[55].mxu1  ;;  %v2418_v19 = vmax.f32 %v2400_v13, 0.0 }
 0xebc   : > { %v2406_v18 = vadd.f32 %v2405_v17, %v2282_v11  ;;  %v2419_v8 = vmax.f32 %v2402_v14, 0.0 }
 0xebd   : > { %v2420_v20 = vmax.f32 %v2404_v16, 0.0 }
 0xebe   : > { %v2421_v21 = vmax.f32 %v2406_v18, 0.0 }
 0xebf   : > { %v2426_v10 = vpack.c.bf16 %v2420_v20, %v2418_v19 }
 0xec0   : > { %v2427_v52 = vpack.c.bf16 %v2421_v21, %v2419_v8  ;;  %v2409_v56 = vpop.f32.mrb[56].mxu1 }
 0xec1   : > { %v2410_v22 = vadd.f32 %v2409_v56, %v2278_v9  ;;  %v2411_v23 = vpop.f32.mrb[57].mxu1  ;;  %v2940_v56 = vld [vmem:[%s4632_s8] ss:$0 sm:$0xff]  ;;  %s3702_s8 = sshll.u32 %s3795_s0, 4  ;;  %s3703_s8 = int_to_ptr.vmem [resolvable:$false] %s3702_s8 }
 0xec2   : > { %v2412_v53 = vadd.f32 %v2411_v23, %v2282_v11  ;;  %v2413_v24 = vpop.f32.mrb[58].mxu1  ;;  %2597 = vmatprep.mubr.bf16.mxu0 %v2427_v52  ;;  %s3704_s16 = scalar_lea.vmem %s3703_s8, 1024  ;;  %p3705_p13 = scmp.lt.s32.totalorder %s4520_s23, %s3703_s8 }
 0xec3   : > { %v2414_v25 = vadd.f32 %v2413_v24, %v2278_v9  ;;  %v2415_v26 = vpop.f32.mrb[59].mxu1  ;;  %2598 = vmatmul.mubr.bf16.vlgmr.msra.gmra.mrb[28].mxu0 %v2426_v10  ;;  %v2422_v51 = vmax.f32 %v2410_v22, 0.0  ;;  %p3706_p0 = scmp.lt.s32.totalorder %s3704_s16, %s3698_s29 }
 0xec4   : > { %v2416_v27 = vadd.f32 %v2415_v26, %v2282_v11  ;;  %v2423_v29 = vmax.f32 %v2412_v53, 0.0  ;;  %v2941_v53 = vld [vmem:[%s4633_s28] ss:$0 sm:$0xff] }
 0xec5   : > { %v2424_v28 = vmax.f32 %v2414_v25, 0.0  ;;  %p3707_p2 = por %p3706_p0, %p3705_p13 }
 0xec6   : > { %v2425_v31 = vmax.f32 %v2416_v27, 0.0 }
 0xec7   : > { %v2428_v32 = vpack.c.bf16 %v2424_v28, %v2422_v51  ;;  %p3708_p8 = pnand %p3707_p2, %p3701_p1 }
 0xec8   : > { %v2429_v33 = vpack.c.bf16 %v2425_v31, %v2423_v29 }
 0xeca   : > { %2605 = vmatprep.mubr.bf16.mxu0 %v2429_v33 }
 0xecb   : > { %2606 = vmatmul.mubr.bf16.gmra.mrb[32].mxu0 %v2428_v32 }
 0xf96   : > { %v3037_v34 = vpop.f32.mrb[28].mxu0 }
 0xf97   : > { %v3038_v36 = vpop.f32.mrb[29].mxu0 }
 0xf98   : > { %v3039_v37 = vadd.f32 %v3038_v36, %v3037_v34  ;;  %v3040_v0 = vpop.f32.mrb[30].mxu0 }
 0xf99   : > { %v3041_v38 = vpop.f32.mrb[31].mxu0 }
 0xf9a   : > { %v2600_v2 = vadd.f32 %v3039_v37, %v2923_v35  ;;  %v3042_v49 = vadd.f32 %v3041_v38, %v3040_v0 }
 0xf9c   : > { %v2603_v39 = vadd.f32 %v3042_v49, %v2923_v35  ;;  %v2614_v40 = vadd.f32 %v2600_v2, %v4482_v46 }
 0xf9e   : > { %v3043_v6 = vpop.f32.mrb[32].mxu0  ;;  %2620 = vadd.xlane.f32.xlu0 %v2614_v40  ;;  %v2615_v41 = vadd.f32 %v2603_v39, %v4484_v43 }
 0xf9f   : > { %v3044_v42 = vpop.f32.mrb[33].mxu0 }
 0xfa0   : > { %v3045_v44 = vadd.f32 %v3044_v42, %v3043_v6  ;;  %v3046_v45 = vpop.f32.mrb[34].mxu0  ;;  %2622 = vadd.xlane.f32.xlu1 %v2615_v41 }
 0xfa1   : > { %v3047_v47 = vpop.f32.mrb[35].mxu0 }
 0xfa2   : > { %v2608_v48 = vadd.f32 %v3045_v44, %v2923_v35  ;;  %v3048_v50 = vadd.f32 %v3047_v47, %v3046_v45 }
 0xfa4   : > { %v2611_v54 = vadd.f32 %v3048_v50, %v2923_v35  ;;  %v2616_v30 = vadd.f32 %v2608_v48, %v4492_v57 }
 0xfa6   : > { %2624 = vadd.xlane.f32.xlu0 %v2616_v30  ;;  %v2617_v58 = vadd.f32 %v2611_v54, %v4490_v55 }
 0xfa8   : > { %2626 = vadd.xlane.f32.xlu1 %v2617_v58 }
0x102b   : > { %v2621_v59 = vpop.xlane.xlu0 %2620 }
0x102c   : > { %v2628_v46 = vmul.f32 0.0078125, %v2621_v59 }
0x102d   : > { %v2623_v60 = vpop.xlane.xlu1 %2622 }
0x102e   : > { %v2632_v61 = vsub.f32 %v2614_v40, %v2628_v46  ;;  %v2629_v62 = vmul.f32 0.0078125, %v2623_v60 }
0x1030   : > { %v2633_v43 = vsub.f32 %v2615_v41, %v2629_v62  ;;  %v2636_v63 = vmul.f32 %v2632_v61, %v2632_v61 }
0x1032   : > { %2640 = vadd.xlane.f32.xlu0 %v2636_v63  ;;  %v2637_v3 = vmul.f32 %v2633_v43, %v2633_v43 }
0x1033   : > { %v2625_v4 = vpop.xlane.xlu0 %2624 }
0x1034   : > { %v2630_v5 = vmul.f32 0.0078125, %v2625_v4  ;;  %2642 = vadd.xlane.f32.xlu1 %v2637_v3 }
0x1035   : > { %v2627_v7 = vpop.xlane.xlu1 %2626 }
0x1036   : > { %v2634_v9 = vsub.f32 %v2616_v30, %v2630_v5  ;;  %v2631_v11 = vmul.f32 0.0078125, %v2627_v7 }
0x1038   : > { %v2635_v57 = vsub.f32 %v2617_v58, %v2631_v11  ;;  %v2638_v12 = vmul.f32 %v2634_v9, %v2634_v9 }
0x103a   : > { %2644 = vadd.xlane.f32.xlu0 %v2638_v12  ;;  %v2639_v55 = vmul.f32 %v2635_v57, %v2635_v57 }
0x103c   : > { %2646 = vadd.xlane.f32.xlu1 %v2639_v55 }
0x10bf   : > { %v2641_v13 = vpop.xlane.xlu0 %2640 }
0x10c0   : > { %v2648_v1 = vmul.f32 0.0078125, %v2641_v13 }
0x10c1   : > { %v2643_v14 = vpop.xlane.xlu1 %2642 }
0x10c2   : > { %v2652_v15 = vadd.f32 1e-05, %v2648_v1  ;;  %v2649_v16 = vmul.f32 0.0078125, %v2643_v14 }
0x10c4   : > { %3488 = vrsqrt.f32 %v2652_v15  ;;  %v2653_v17 = vadd.f32 1e-05, %v2649_v16 }
0x10c6   : > { %3490 = vrsqrt.f32 %v2653_v17 }
0x10c7   : > { %v2645_v18 = vpop.xlane.xlu0 %2644 }
0x10c8   : > { %v2650_v19 = vmul.f32 0.0078125, %v2645_v18 }
0x10c9   : > { %v2647_v20 = vpop.xlane.xlu1 %2646 }
0x10ca   : > { %v2654_v8 = vadd.f32 1e-05, %v2650_v19  ;;  %v2651_v21 = vmul.f32 0.0078125, %v2647_v20 }
0x10cc   : > { %3492 = vrsqrt.f32 %v2654_v8  ;;  %v2655_v10 = vadd.f32 1e-05, %v2651_v21 }
0x10ce   : > { %v3489_v52 = vpop.eup %3488  ;;  %3494 = vrsqrt.f32 %v2655_v10 }
0x10cf   : > { %v2660_v22 = vmul.f32 %v3489_v52, %v2632_v61 }
0x10d0   : > { %v3491_v23 = vpop.eup %3490 }
0x10d1   : > { %v2670_v24 = vmul.f32 %v2940_v56, %v2660_v22  ;;  %v2661_v25 = vmul.f32 %v3491_v23, %v2633_v43 }
0x10d3   : > { %v2680_v26 = vadd.f32 %v2941_v53, %v2670_v24  ;;  %v2671_v27 = vmul.f32 %v2940_v56, %v2661_v25 }
0x10d5   : > { %2684 = vst [vmem:[%s653_s15] sm:$0xff] %v2680_v26  ;;  %v2681_v51 = vadd.f32 %v2941_v53, %v2671_v27 }
0x10d6   : > { %v3493_v28 = vpop.eup %3492 }
0x10d7   : > { %2685 = vst [vmem:[%s653_s15 + $0x8] sm:$0xff] %v2681_v51  ;;  %v2662_v29 = vmul.f32 %v3493_v28, %v2634_v9 }
0x10d8   : > { %v3495_v31 = vpop.eup %3494 }
0x10d9   : > { %v2672_v32 = vmul.f32 %v2940_v56, %v2662_v29  ;;  %v2663_v33 = vmul.f32 %v3495_v31, %v2635_v57 }
0x10db   : > { %v2682_v34 = vadd.f32 %v2941_v53, %v2672_v32  ;;  %v2673_v35 = vmul.f32 %v2940_v56, %v2663_v33 }
0x10dd   : > { %2686 = vst [vmem:[%s653_s15 + $0x10] sm:$0xff] %v2682_v34  ;;  %v2683_v36 = vadd.f32 %v2941_v53, %v2673_v35 }
0x10df   : > { %2687 = vst [vmem:[%s653_s15 + $0x18] sm:$0xff] %v2683_v36 }
0x10e0   : > { %3711 = shalt.err (!%p3708_p8)
}
0x10e1   : > { %s3712_s3 = scalar_lea.hbm %s4518_s13, 512  ;;  %s3716_s19 = scalar_lea.hbm %s4634_s30, 1024 }
0x10e2   : > { %p3713_p4 = scmp.ne.s32.totalorder %s4518_s13, %s3712_s3  ;;  %p3717_p3 = scmp.lt.u32.totalorder %s4518_s13, %s4634_s30 }
0x10e3   : > { %p3718_p5 = scmp.lt.u32.totalorder %s3716_s19, %s3712_s3  ;;  %p3720_p6 = scmp.lt.u32.totalorder %s3712_s3, %s4518_s13 }
0x10e4   : > { %p3714_p10 = pnand %p3713_p4, %p4635_p9 }
0x10e5   : > { %p3719_p7 = por %p3718_p5, %p3717_p3 }
0x10e6   : > { %p3715_p11 = pneg %p3714_p10 }
0x10e7   : > { %p3721_p12 = por %p3720_p6, %p3719_p7 }
0x10e9   : > { %p3722_p1 = pnand %p3721_p12, %p3715_p11 }
0x10eb   : > { %3725 = shalt.err (!%p3722_p1)
}
0x10ec   : > { %s3796_s29 = smov 128   ;;  %s3797_s0 = smov 8  }
0x10ed   : > { %3251 = dma.vmem_to_hbm [thread:$0]  (%p4635_p9), %s4520_s23, 512, %s4518_s13, %s2689_s1, %s3796_s29, %s3796_s29, %s3797_s0  }
0x10ee PF: > { %s2717_s8 = sand.u32 1, %s3764_s24   ;;  %p4636_p13 = scmp.ne.s32.totalorder %s4616_s20, 0 }
0x10ef   : > { %p4637_p0 = scmp.ge.s32.totalorder %s3776_s27, 2  ;;  %s2718_s16 = scalar_lea.sflag [#allocation5], %s2717_s8 }
0x10f1   : > { %p3277_p2 = pnand %p4637_p0, %p4636_p13 }
0x10f3   : > { %3759 = dma.done.wait (!%p3277_p2), %s2718_s16, 512  }
0x10f4   : > { %3761 = vsyncadd (!%p3277_p2), %s2718_s16, 4294966784  ;;  %p33_p8 = scmp.ge.s32.totalorder %s4082_s18, 4   ;;  %s4638_s24 = smov %s3768_s25 }
0x10f5   : > { %s4639_s25 = smov %s3772_s26  ;;  %s4640_s26 = smov %s4093_s14 }
0x10f6   : > { %s4641_s27 = smov %s4082_s18  ;;  %35 = sbr.rel (!%p33_p8) target bundleno = 20 (0x14), region = 157 }
0x10fd   :  { %2723 = vsyncpa [#allocation4], 1 }
0x10fe   :  { %2725 = vsyncpa [#allocation4 + $0x1], 1 }
0x10ff   :  { %2726 = vsyncpa [#allocation7], 1 }
0x1100   :  { %2727 = vsyncpa [#allocation10], 1 }
0x1101   :  { %2728 = vsyncpa [#allocation13], 1 }
0x1102   :  { %2729 = vsyncpa [#allocation5], 1 }
0x1103   :  { %2731 = vsyncpa [#allocation5 + $0x1], 1 }

</bundles_post_ra>
